<compile_context>
chip_gen: v5e
topology: v5e:2x2
jax: 0.10.0
libtpu: 0.0.40
codegen_flags: <defaults>
</compile_context>

<pallas_src>
import math
from functools import partial

import jax
import jax.numpy as jnp
from jax.experimental import pallas as pl
from jax.experimental.pallas import tpu as pltpu

_PI = math.pi
_PIO2 = math.pi / 2.0
# arccos is monotone decreasing: cos in [-1+1e-7, 1-1e-7]  <=>  angle in [LO, HI]
_ACOS_LO = math.acos(1.0 - 1e-7)
_ACOS_HI = math.acos(-1.0 + 1e-7)

_LANE = 128
_MAX_TILE_ROWS = 512            # 512*128 = 65536 batch elems / tile (~6 MiB dbl-buffered)


def _round_up(x, m):
    return ((x + m - 1) // m) * m


def _acos(x):
    """Branchless float32 arccos (Cephes-style), abs error ~1e-7 rad.

    Only uses mul/add/abs/sqrt/compare/select, all of which have guaranteed
    Mosaic lowerings (avoids relying on an acos/atan2 primitive in-kernel).
    Assumes x in [-1, 1] (we clip beforehand).
    """
    a = jnp.abs(x)
    small = a <= 0.5
    z = jnp.where(small, a * a, 0.5 * (1.0 - a))
    s = jnp.where(small, a, jnp.sqrt(z))
    p = ((((4.2163199048e-2 * z + 2.4181311049e-2) * z + 4.5470025998e-2) * z
          + 7.4953002686e-2) * z + 1.6666752422e-1)
    r = s + s * z * p                          # ~= asin(s) for s in [0, 0.707]
    neg = x < 0.0
    acos_small = jnp.where(neg, _PIO2 + r, _PIO2 - r)      # |x| <= 0.5
    acos_big = jnp.where(neg, _PI - 2.0 * r, 2.0 * r)      # |x| >  0.5
    return jnp.where(small, acos_small, acos_big)


def _rot_entries(c, s):
    """cos/sin blocks (3, TR, 128) -> 9 rotation entries, each dense (TR, 128)."""
    cx, cy, cz = c[0], c[1], c[2]
    sx, sy, sz = s[0], s[1], s[2]
    return (
        cy * cz, -cy * sz, sy,
        sx * sy * cz + cx * sz, -sx * sy * sz + cx * cz, -sx * cy,
        -cx * sy * cz + sx * sz, cx * sy * sz + sx * cz, cx * cy,
    )


def _pose_loss_kernel(gt_ref, pred_ref, out_ref, *, gt_is_matrix, batch, tile_rows):
    """One batch tile.

    gt_ref:   (3, TR, 128) packed GT euler   OR (9, TR, 128) packed GT R (row-major).
    pred_ref: (3, TR, 128) packed predicted euler angles.
    out_ref:  (2, 128) per-tile partials; row 0 = sum(clipped angle) [loss path],
              row 1 = sum(angle) [deg path]; only lane 0 is non-zero.
    """
    i = pl.program_id(0)

    pred_e = pred_ref[...]                                   # (3, TR, 128)
    cp, sp = jnp.cos(pred_e), jnp.sin(pred_e)                # one EUP pass per fn
    Rp = _rot_entries(cp, sp)

    gt = gt_ref[...]
    if gt_is_matrix:                                         # static python flag
        Rg = tuple(gt[j] for j in range(9))
    else:
        cg, sg = jnp.cos(gt), jnp.sin(gt)
        Rg = _rot_entries(cg, sg)

    # trace(R_pred^T @ R_gt) = sum_ij Rp[ij] * Rg[ij]   -> dense (TR, 128)
    trace = Rp[0] * Rg[0]
    for a, b in zip(Rp[1:], Rg[1:]):
        trace = trace + a * b

    cos_val = jnp.clip((trace - 1.0) * 0.5, -1.0, 1.0)
    ang = _acos(cos_val)                                     # deg path (hard clip)
    ang_loss = jnp.clip(ang, _ACOS_LO, _ACOS_HI)             # eps-clipped loss path

    # Mask padded batch entries (flattened index >= batch contributes 0).
    rows = jax.lax.broadcasted_iota(jnp.int32, ang.shape, 0)
    lanes = jax.lax.broadcasted_iota(jnp.int32, ang.shape, 1)
    flat = (i * tile_rows + rows) * _LANE + lanes
    valid = flat < batch

    s_loss = jnp.sum(jnp.where(valid, ang_loss, 0.0), keepdims=True)   # (1, 1)
    s_deg = jnp.sum(jnp.where(valid, ang, 0.0), keepdims=True)         # (1, 1)

    # Single lane-aligned (2, 128) store: partials in lane 0, zeros elsewhere,
    # so the wrapper can reduce with a plain sum over the lane axis.
    orow = jax.lax.broadcasted_iota(jnp.int32, (2, _LANE), 0)
    olane = jax.lax.broadcasted_iota(jnp.int32, (2, _LANE), 1)
    vals = jnp.where(orow == 0, s_loss, s_deg)
    out_ref[...] = jnp.where(olane == 0, vals, 0.0)


def euler_angle_pose_loss(labels, preds, w_rot: float = 1.0):
    """JAX/Pallas equivalent of EulerAnglePoseLoss.forward."""
    B = preds.shape[0]
    nb = -(-B // _LANE)                                      # cdiv(B, 128)
    if nb <= _MAX_TILE_ROWS:
        tile_rows = nb
        nb_pad = nb
    else:
        tile_rows = _MAX_TILE_ROWS
        nb_pad = _round_up(nb, tile_rows)
    Bp = nb_pad * _LANE
    n_tiles = nb_pad // tile_rows

    def pack(x2d):
        # (B, C) -> (C, nb_pad, 128): one fused pad+transpose+reshape, giving
        # sublane/lane-dense per-channel planes for the kernel.
        C = x2d.shape[1]
        x2d = jnp.pad(x2d.astype(jnp.float32), ((0, Bp - B), (0, 0)))
        return x2d.T.reshape(C, nb_pad, _LANE)

    pred_pk = pack(preds[:, :3])

    if "R" in labels:
        gt_pk = pack(labels["R"].reshape(B, 9))              # 9 dense (nB,128) planes
        gt_rows, gt_is_matrix = 9, True
    else:
        gt_pk = pack(labels["euler"])
        gt_rows, gt_is_matrix = 3, False

    kernel = partial(_pose_loss_kernel, gt_is_matrix=gt_is_matrix,
                     batch=B, tile_rows=tile_rows)

    n_trans = (6 if gt_is_matrix else 12) * Bp               # sin/cos count
    flops = (60 if gt_is_matrix else 90) * Bp                # rot algebra + trace + acos poly
    bytes_accessed = (gt_pk.size + pred_pk.size + 2 * n_tiles * _LANE) * 4

    out = pl.pallas_call(
        kernel,
        out_shape=jax.ShapeDtypeStruct((2, n_tiles * _LANE), jnp.float32),
        grid=(n_tiles,),
        in_specs=[
            pl.BlockSpec((gt_rows, tile_rows, _LANE), lambda i: (0, i, 0)),
            pl.BlockSpec((3, tile_rows, _LANE), lambda i: (0, i, 0)),
        ],
        out_specs=pl.BlockSpec((2, _LANE), lambda i: (0, i)),
        compiler_params=pltpu.CompilerParams(
            dimension_semantics=("parallel",)),               # 2-TC sharding on v7x
        cost_estimate=pl.CostEstimate(
            flops=flops, transcendentals=n_trans, bytes_accessed=bytes_accessed),
    )(gt_pk, pred_pk)

    sums = jnp.sum(out, axis=1)                              # (2,) — tiny wrapper reduce
    rot_loss = sums[0] * (w_rot / B)
    rot_deg = sums[1] * (180.0 / _PI / B)
    return rot_loss, {"rot_loss": rot_loss, "rot_deg_mean": rot_deg}


# ---------------- pure-JAX reference (faithful to the PyTorch spec) ----------------
def _rotmat_from_euler_ref(e):
    x, y, z = e[:, 0], e[:, 1], e[:, 2]
    cx, sx = jnp.cos(x), jnp.sin(x)
    cy, sy = jnp.cos(y), jnp.sin(y)
    cz, sz = jnp.cos(z), jnp.sin(z)
    row1 = jnp.stack([cy * cz, -cy * sz, sy], axis=1)
    row2 = jnp.stack([sx * sy * cz + cx * sz, -sx * sy * sz + cx * cz, -sx * cy], axis=1)
    row3 = jnp.stack([-cx * sy * cz + sx * sz, cx * sy * sz + sx * cz, cx * cy], axis=1)
    return jnp.stack([row1, row2, row3], axis=1)


def _ref_loss(labels, preds, w_rot=1.0):
    pred_euler = preds[:, :3]
    R_gt = labels["R"] if "R" in labels else _rotmat_from_euler_ref(labels["euler"])
    R_pred = _rotmat_from_euler_ref(jnp.mod(pred_euler + _PI, 2 * _PI) - _PI)
    R_rel = jnp.einsum("bji,bjk->bik", R_pred, R_gt)
    trace = R_rel[:, 0, 0] + R_rel[:, 1, 1] + R_rel[:, 2, 2]
    ang = jnp.arccos(jnp.clip((trace - 1) / 2, -1 + 1e-7, 1 - 1e-7))
    deg = jnp.degrees(jnp.arccos(jnp.clip((trace - 1) / 2, -1.0, 1.0)))
    return ang.mean() * w_rot, deg.mean()


if __name__ == "__main__":
    key = jax.random.PRNGKey(0)
    k1, k2 = jax.random.split(key)
    B = 8
    # preds: (B, 6) — first 3 channels are the predicted Euler angles
    preds = jax.random.normal(k1, (B, 6), dtype=jnp.float32) * 2.0
    gt_euler = jax.random.uniform(k2, (B, 3), dtype=jnp.float32,
                                  minval=-_PI, maxval=_PI)

    # Path 1: labels carry Euler angles
    labels_e = {"euler": gt_euler}
    loss_e, aux_e = euler_angle_pose_loss(labels_e, preds, w_rot=1.0)
    jax.block_until_ready(loss_e)
    jax.block_until_ready(aux_e["rot_deg_mean"])

    # Path 2: labels carry rotation matrices directly
    labels_r = {"R": _rotmat_from_euler_ref(gt_euler)}
    loss_r, aux_r = euler_angle_pose_loss(labels_r, preds, w_rot=1.0)
    jax.block_until_ready(loss_r)

    # Verify against pure-JAX reference (which keeps the PyTorch mod-wrap)
    ref_l, ref_d = _ref_loss(labels_e, preds)
    assert jnp.allclose(loss_e, ref_l, atol=1e-3), (loss_e, ref_l)
    assert jnp.allclose(aux_e["rot_deg_mean"], ref_d, atol=0.1), (aux_e["rot_deg_mean"], ref_d)
    assert jnp.allclose(loss_r, ref_l, atol=1e-3), (loss_r, ref_l)
    assert jnp.allclose(aux_r["rot_deg_mean"], ref_d, atol=0.1), (aux_r["rot_deg_mean"], ref_d)

    print("KERNEL_OK")
</pallas_src>

<mosaic_0001>
module attributes {stable_mosaic.version = 11 : i64} {
  func.func @_pose_loss_kernel(%arg0: i32, %arg1: memref<3x1x128xf32, #tpu.memory_space<vmem>>, %arg2: memref<3x1x128xf32, #tpu.memory_space<vmem>>, %arg3: memref<2x128xf32, #tpu.memory_space<vmem>>) attributes {dimension_semantics = [#tpu.dimension_semantics<parallel>], iteration_bounds = array<i64: 1>, scalar_prefetch = 0 : i64, scratch_operands = 0 : i64, tpu.core_type = #tpu.core_type<tc>, window_params = [{transform_indices = @transform_0, window_bounds = array<i64: 3, 1, 128>}, {transform_indices = @transform_1, window_bounds = array<i64: 3, 1, 128>}, {transform_indices = @transform_2, window_bounds = array<i64: 2, 128>}]} {
    %c0 = arith.constant 0 : index
    %c0_0 = arith.constant 0 : index
    %c0_1 = arith.constant 0 : index
    %0 = vector.load %arg2[%c0, %c0_0, %c0_1] : memref<3x1x128xf32, #tpu.memory_space<vmem>>, vector<3x1x128xf32>
    %1 = math.cos %0 : vector<3x1x128xf32>
    %2 = math.sin %0 : vector<3x1x128xf32>
    %3 = vector.extract_strided_slice %1 {offsets = [0, 0, 0], sizes = [1, 1, 128], strides = [1, 1, 1]} : vector<3x1x128xf32> to vector<1x1x128xf32>
    %4 = vector.shape_cast %3 : vector<1x1x128xf32> to vector<1x128xf32>
    %5 = vector.extract_strided_slice %1 {offsets = [1, 0, 0], sizes = [1, 1, 128], strides = [1, 1, 1]} : vector<3x1x128xf32> to vector<1x1x128xf32>
    %6 = vector.shape_cast %5 : vector<1x1x128xf32> to vector<1x128xf32>
    %7 = vector.extract_strided_slice %1 {offsets = [2, 0, 0], sizes = [1, 1, 128], strides = [1, 1, 1]} : vector<3x1x128xf32> to vector<1x1x128xf32>
    %8 = vector.shape_cast %7 : vector<1x1x128xf32> to vector<1x128xf32>
    %9 = vector.extract_strided_slice %2 {offsets = [0, 0, 0], sizes = [1, 1, 128], strides = [1, 1, 1]} : vector<3x1x128xf32> to vector<1x1x128xf32>
    %10 = vector.shape_cast %9 : vector<1x1x128xf32> to vector<1x128xf32>
    %11 = vector.extract_strided_slice %2 {offsets = [1, 0, 0], sizes = [1, 1, 128], strides = [1, 1, 1]} : vector<3x1x128xf32> to vector<1x1x128xf32>
    %12 = vector.shape_cast %11 : vector<1x1x128xf32> to vector<1x128xf32>
    %13 = vector.extract_strided_slice %2 {offsets = [2, 0, 0], sizes = [1, 1, 128], strides = [1, 1, 1]} : vector<3x1x128xf32> to vector<1x1x128xf32>
    %14 = vector.shape_cast %13 : vector<1x1x128xf32> to vector<1x128xf32>
    %15 = arith.mulf %6, %8 : vector<1x128xf32>
    %cst = arith.constant 0.000000e+00 : f32
    %16 = vector.broadcast %cst : f32 to vector<1x128xf32>
    %17 = arith.subf %16, %6 : vector<1x128xf32>
    %18 = arith.mulf %17, %14 : vector<1x128xf32>
    %19 = arith.mulf %10, %12 : vector<1x128xf32>
    %20 = arith.mulf %19, %8 : vector<1x128xf32>
    %21 = arith.mulf %4, %14 : vector<1x128xf32>
    %22 = arith.addf %20, %21 : vector<1x128xf32>
    %cst_2 = arith.constant 0.000000e+00 : f32
    %23 = vector.broadcast %cst_2 : f32 to vector<1x128xf32>
    %24 = arith.subf %23, %10 : vector<1x128xf32>
    %25 = arith.mulf %24, %12 : vector<1x128xf32>
    %26 = arith.mulf %25, %14 : vector<1x128xf32>
    %27 = arith.mulf %4, %8 : vector<1x128xf32>
    %28 = arith.addf %26, %27 : vector<1x128xf32>
    %cst_3 = arith.constant 0.000000e+00 : f32
    %29 = vector.broadcast %cst_3 : f32 to vector<1x128xf32>
    %30 = arith.subf %29, %10 : vector<1x128xf32>
    %31 = arith.mulf %30, %6 : vector<1x128xf32>
    %cst_4 = arith.constant 0.000000e+00 : f32
    %32 = vector.broadcast %cst_4 : f32 to vector<1x128xf32>
    %33 = arith.subf %32, %4 : vector<1x128xf32>
    %34 = arith.mulf %33, %12 : vector<1x128xf32>
    %35 = arith.mulf %34, %8 : vector<1x128xf32>
    %36 = arith.mulf %10, %14 : vector<1x128xf32>
    %37 = arith.addf %35, %36 : vector<1x128xf32>
    %38 = arith.mulf %4, %12 : vector<1x128xf32>
    %39 = arith.mulf %38, %14 : vector<1x128xf32>
    %40 = arith.mulf %10, %8 : vector<1x128xf32>
    %41 = arith.addf %39, %40 : vector<1x128xf32>
    %42 = arith.mulf %4, %6 : vector<1x128xf32>
    %c0_5 = arith.constant 0 : index
    %c0_6 = arith.constant 0 : index
    %c0_7 = arith.constant 0 : index
    %43 = vector.load %arg1[%c0_5, %c0_6, %c0_7] : memref<3x1x128xf32, #tpu.memory_space<vmem>>, vector<3x1x128xf32>
    %44 = math.cos %43 : vector<3x1x128xf32>
    %45 = math.sin %43 : vector<3x1x128xf32>
    %46 = vector.extract_strided_slice %44 {offsets = [0, 0, 0], sizes = [1, 1, 128], strides = [1, 1, 1]} : vector<3x1x128xf32> to vector<1x1x128xf32>
    %47 = vector.shape_cast %46 : vector<1x1x128xf32> to vector<1x128xf32>
    %48 = vector.extract_strided_slice %44 {offsets = [1, 0, 0], sizes = [1, 1, 128], strides = [1, 1, 1]} : vector<3x1x128xf32> to vector<1x1x128xf32>
    %49 = vector.shape_cast %48 : vector<1x1x128xf32> to vector<1x128xf32>
    %50 = vector.extract_strided_slice %44 {offsets = [2, 0, 0], sizes = [1, 1, 128], strides = [1, 1, 1]} : vector<3x1x128xf32> to vector<1x1x128xf32>
    %51 = vector.shape_cast %50 : vector<1x1x128xf32> to vector<1x128xf32>
    %52 = vector.extract_strided_slice %45 {offsets = [0, 0, 0], sizes = [1, 1, 128], strides = [1, 1, 1]} : vector<3x1x128xf32> to vector<1x1x128xf32>
    %53 = vector.shape_cast %52 : vector<1x1x128xf32> to vector<1x128xf32>
    %54 = vector.extract_strided_slice %45 {offsets = [1, 0, 0], sizes = [1, 1, 128], strides = [1, 1, 1]} : vector<3x1x128xf32> to vector<1x1x128xf32>
    %55 = vector.shape_cast %54 : vector<1x1x128xf32> to vector<1x128xf32>
    %56 = vector.extract_strided_slice %45 {offsets = [2, 0, 0], sizes = [1, 1, 128], strides = [1, 1, 1]} : vector<3x1x128xf32> to vector<1x1x128xf32>
    %57 = vector.shape_cast %56 : vector<1x1x128xf32> to vector<1x128xf32>
    %58 = arith.mulf %49, %51 : vector<1x128xf32>
    %cst_8 = arith.constant 0.000000e+00 : f32
    %59 = vector.broadcast %cst_8 : f32 to vector<1x128xf32>
    %60 = arith.subf %59, %49 : vector<1x128xf32>
    %61 = arith.mulf %60, %57 : vector<1x128xf32>
    %62 = arith.mulf %53, %55 : vector<1x128xf32>
    %63 = arith.mulf %62, %51 : vector<1x128xf32>
    %64 = arith.mulf %47, %57 : vector<1x128xf32>
    %65 = arith.addf %63, %64 : vector<1x128xf32>
    %cst_9 = arith.constant 0.000000e+00 : f32
    %66 = vector.broadcast %cst_9 : f32 to vector<1x128xf32>
    %67 = arith.subf %66, %53 : vector<1x128xf32>
    %68 = arith.mulf %67, %55 : vector<1x128xf32>
    %69 = arith.mulf %68, %57 : vector<1x128xf32>
    %70 = arith.mulf %47, %51 : vector<1x128xf32>
    %71 = arith.addf %69, %70 : vector<1x128xf32>
    %cst_10 = arith.constant 0.000000e+00 : f32
    %72 = vector.broadcast %cst_10 : f32 to vector<1x128xf32>
    %73 = arith.subf %72, %53 : vector<1x128xf32>
    %74 = arith.mulf %73, %49 : vector<1x128xf32>
    %cst_11 = arith.constant 0.000000e+00 : f32
    %75 = vector.broadcast %cst_11 : f32 to vector<1x128xf32>
    %76 = arith.subf %75, %47 : vector<1x128xf32>
    %77 = arith.mulf %76, %55 : vector<1x128xf32>
    %78 = arith.mulf %77, %51 : vector<1x128xf32>
    %79 = arith.mulf %53, %57 : vector<1x128xf32>
    %80 = arith.addf %78, %79 : vector<1x128xf32>
    %81 = arith.mulf %47, %55 : vector<1x128xf32>
    %82 = arith.mulf %81, %57 : vector<1x128xf32>
    %83 = arith.mulf %53, %51 : vector<1x128xf32>
    %84 = arith.addf %82, %83 : vector<1x128xf32>
    %85 = arith.mulf %47, %49 : vector<1x128xf32>
    %86 = arith.mulf %15, %58 : vector<1x128xf32>
    %87 = arith.mulf %18, %61 : vector<1x128xf32>
    %88 = arith.addf %86, %87 : vector<1x128xf32>
    %89 = arith.mulf %12, %55 : vector<1x128xf32>
    %90 = arith.addf %88, %89 : vector<1x128xf32>
    %91 = arith.mulf %22, %65 : vector<1x128xf32>
    %92 = arith.addf %90, %91 : vector<1x128xf32>
    %93 = arith.mulf %28, %71 : vector<1x128xf32>
    %94 = arith.addf %92, %93 : vector<1x128xf32>
    %95 = arith.mulf %31, %74 : vector<1x128xf32>
    %96 = arith.addf %94, %95 : vector<1x128xf32>
    %97 = arith.mulf %37, %80 : vector<1x128xf32>
    %98 = arith.addf %96, %97 : vector<1x128xf32>
    %99 = arith.mulf %41, %84 : vector<1x128xf32>
    %100 = arith.addf %98, %99 : vector<1x128xf32>
    %101 = arith.mulf %42, %85 : vector<1x128xf32>
    %102 = arith.addf %100, %101 : vector<1x128xf32>
    %cst_12 = arith.constant 1.000000e+00 : f32
    %103 = vector.broadcast %cst_12 : f32 to vector<1x128xf32>
    %104 = arith.subf %102, %103 : vector<1x128xf32>
    %cst_13 = arith.constant 5.000000e-01 : f32
    %105 = vector.broadcast %cst_13 : f32 to vector<1x128xf32>
    %106 = arith.mulf %104, %105 : vector<1x128xf32>
    %cst_14 = arith.constant -1.000000e+00 : f32
    %cst_15 = arith.constant 1.000000e+00 : f32
    %107 = vector.broadcast %cst_14 : f32 to vector<1x128xf32>
    %108 = arith.maximumf %107, %106 : vector<1x128xf32>
    %109 = vector.broadcast %cst_15 : f32 to vector<1x128xf32>
    %110 = arith.minimumf %109, %108 : vector<1x128xf32>
    %111 = math.absf %110 : vector<1x128xf32>
    %cst_16 = arith.constant 5.000000e-01 : f32
    %112 = vector.broadcast %cst_16 : f32 to vector<1x128xf32>
    %113 = arith.cmpf ole, %111, %112 : vector<1x128xf32>
    %114 = arith.mulf %111, %111 : vector<1x128xf32>
    %cst_17 = arith.constant 1.000000e+00 : f32
    %115 = vector.broadcast %cst_17 : f32 to vector<1x128xf32>
    %116 = arith.subf %115, %111 : vector<1x128xf32>
    %cst_18 = arith.constant 5.000000e-01 : f32
    %117 = vector.broadcast %cst_18 : f32 to vector<1x128xf32>
    %118 = arith.mulf %117, %116 : vector<1x128xf32>
    %119 = arith.select %113, %114, %118 : vector<1x128xi1>, vector<1x128xf32>
    %120 = math.sqrt %119 : vector<1x128xf32>
    %121 = arith.select %113, %111, %120 : vector<1x128xi1>, vector<1x128xf32>
    %cst_19 = arith.constant 4.216320e-02 : f32
    %122 = vector.broadcast %cst_19 : f32 to vector<1x128xf32>
    %123 = arith.mulf %122, %119 : vector<1x128xf32>
    %cst_20 = arith.constant 0.024181312 : f32
    %124 = vector.broadcast %cst_20 : f32 to vector<1x128xf32>
    %125 = arith.addf %123, %124 : vector<1x128xf32>
    %126 = arith.mulf %125, %119 : vector<1x128xf32>
    %cst_21 = arith.constant 0.0454700254 : f32
    %127 = vector.broadcast %cst_21 : f32 to vector<1x128xf32>
    %128 = arith.addf %126, %127 : vector<1x128xf32>
    %129 = arith.mulf %128, %119 : vector<1x128xf32>
    %cst_22 = arith.constant 0.0749530047 : f32
    %130 = vector.broadcast %cst_22 : f32 to vector<1x128xf32>
    %131 = arith.addf %129, %130 : vector<1x128xf32>
    %132 = arith.mulf %131, %119 : vector<1x128xf32>
    %cst_23 = arith.constant 0.166667521 : f32
    %133 = vector.broadcast %cst_23 : f32 to vector<1x128xf32>
    %134 = arith.addf %132, %133 : vector<1x128xf32>
    %135 = arith.mulf %121, %119 : vector<1x128xf32>
    %136 = arith.mulf %135, %134 : vector<1x128xf32>
    %137 = arith.addf %121, %136 : vector<1x128xf32>
    %cst_24 = arith.constant 0.000000e+00 : f32
    %138 = vector.broadcast %cst_24 : f32 to vector<1x128xf32>
    %139 = arith.cmpf olt, %110, %138 : vector<1x128xf32>
    %cst_25 = arith.constant 1.57079637 : f32
    %140 = vector.broadcast %cst_25 : f32 to vector<1x128xf32>
    %141 = arith.addf %140, %137 : vector<1x128xf32>
    %cst_26 = arith.constant 1.57079637 : f32
    %142 = vector.broadcast %cst_26 : f32 to vector<1x128xf32>
    %143 = arith.subf %142, %137 : vector<1x128xf32>
    %144 = arith.select %139, %141, %143 : vector<1x128xi1>, vector<1x128xf32>
    %cst_27 = arith.constant 2.000000e+00 : f32
    %145 = vector.broadcast %cst_27 : f32 to vector<1x128xf32>
    %146 = arith.mulf %145, %137 : vector<1x128xf32>
    %cst_28 = arith.constant 3.14159274 : f32
    %147 = vector.broadcast %cst_28 : f32 to vector<1x128xf32>
    %148 = arith.subf %147, %146 : vector<1x128xf32>
    %cst_29 = arith.constant 2.000000e+00 : f32
    %149 = vector.broadcast %cst_29 : f32 to vector<1x128xf32>
    %150 = arith.mulf %149, %137 : vector<1x128xf32>
    %151 = arith.select %139, %148, %150 : vector<1x128xi1>, vector<1x128xf32>
    %152 = arith.select %113, %144, %151 : vector<1x128xi1>, vector<1x128xf32>
    %cst_30 = arith.constant 4.47213592E-4 : f32
    %cst_31 = arith.constant 3.14114547 : f32
    %153 = vector.broadcast %cst_30 : f32 to vector<1x128xf32>
    %154 = arith.maximumf %153, %152 : vector<1x128xf32>
    %155 = vector.broadcast %cst_31 : f32 to vector<1x128xf32>
    %156 = arith.minimumf %155, %154 : vector<1x128xf32>
    %157 = tpu.iota {dimensions = array<i32: 0>} : vector<1x128xi32>
    %158 = tpu.iota {dimensions = array<i32: 1>} : vector<1x128xi32>
    %c1_i32 = arith.constant 1 : i32
    %159 = arith.muli %arg0, %c1_i32 : i32
    %160 = vector.broadcast %159 : i32 to vector<1x128xi32>
    %161 = arith.addi %160, %157 : vector<1x128xi32>
    %c128_i32 = arith.constant 128 : i32
    %162 = vector.broadcast %c128_i32 : i32 to vector<1x128xi32>
    %163 = arith.muli %161, %162 : vector<1x128xi32>
    %164 = arith.addi %163, %158 : vector<1x128xi32>
    %c8_i32 = arith.constant 8 : i32
    %165 = vector.broadcast %c8_i32 : i32 to vector<1x128xi32>
    %166 = arith.cmpi slt, %164, %165 : vector<1x128xi32>
    %cst_32 = arith.constant 0.000000e+00 : f32
    %167 = vector.broadcast %cst_32 : f32 to vector<1x128xf32>
    %168 = arith.select %166, %156, %167 : vector<1x128xi1>, vector<1x128xf32>
    %169 = vector.shape_cast %168 : vector<1x128xf32> to vector<1x1x128xf32>
    %cst_33 = arith.constant dense<0.000000e+00> : vector<1xf32>
    %170 = vector.multi_reduction <add>, %169, %cst_33 [1, 2] : vector<1x1x128xf32> to vector<1xf32>
    %171 = vector.shape_cast %170 : vector<1xf32> to vector<1x1x1xf32>
    %172 = vector.extract %171[0, 0, 0] : f32 from vector<1x1x1xf32>
    %173 = vector.broadcast %172 : f32 to vector<1x1xf32>
    %cst_34 = arith.constant 0.000000e+00 : f32
    %174 = vector.broadcast %cst_34 : f32 to vector<1x128xf32>
    %175 = arith.select %166, %152, %174 : vector<1x128xi1>, vector<1x128xf32>
    %176 = vector.shape_cast %175 : vector<1x128xf32> to vector<1x1x128xf32>
    %cst_35 = arith.constant dense<0.000000e+00> : vector<1xf32>
    %177 = vector.multi_reduction <add>, %176, %cst_35 [1, 2] : vector<1x1x128xf32> to vector<1xf32>
    %178 = vector.shape_cast %177 : vector<1xf32> to vector<1x1x1xf32>
    %179 = vector.extract %178[0, 0, 0] : f32 from vector<1x1x1xf32>
    %180 = vector.broadcast %179 : f32 to vector<1x1xf32>
    %181 = tpu.iota {dimensions = array<i32: 0>} : vector<2x128xi32>
    %182 = tpu.iota {dimensions = array<i32: 1>} : vector<2x128xi32>
    %c0_i32 = arith.constant 0 : i32
    %183 = vector.broadcast %c0_i32 : i32 to vector<2x128xi32>
    %184 = arith.cmpi eq, %181, %183 : vector<2x128xi32>
    %185 = vector.shape_cast %173 : vector<1x1xf32> to vector<1x1xf32>
    %186 = vector.broadcast %185 : vector<1x1xf32> to vector<2x128xf32>
    %187 = vector.shape_cast %180 : vector<1x1xf32> to vector<1x1xf32>
    %188 = vector.broadcast %187 : vector<1x1xf32> to vector<2x128xf32>
    %189 = arith.select %184, %186, %188 : vector<2x128xi1>, vector<2x128xf32>
    %c0_i32_36 = arith.constant 0 : i32
    %190 = vector.broadcast %c0_i32_36 : i32 to vector<2x128xi32>
    %191 = arith.cmpi eq, %182, %190 : vector<2x128xi32>
    %cst_37 = arith.constant 0.000000e+00 : f32
    %192 = vector.broadcast %cst_37 : f32 to vector<2x128xf32>
    %193 = arith.select %191, %189, %192 : vector<2x128xi1>, vector<2x128xf32>
    %c0_38 = arith.constant 0 : index
    %c0_39 = arith.constant 0 : index
    %194 = vector.load %arg3[%c0_38, %c0_39] : memref<2x128xf32, #tpu.memory_space<vmem>>, vector<2x128xf32>
    tpu.vector_store %arg3[%c0_38, %c0_39], %193 {strides = array<i32>} : memref<2x128xf32, #tpu.memory_space<vmem>>, vector<2x128xf32>,
    return
  }
  func.func @transform_0(%arg0: i32) -> (i32, i32, i32) {
    %c0_i32 = arith.constant 0 : i32
    %c0_i32_0 = arith.constant 0 : i32
    %c0_i32_1 = arith.constant 0 : i32
    return %c0_i32, %arg0, %c0_i32_0 : i32, i32, i32
  }
  func.func @transform_1(%arg0: i32) -> (i32, i32, i32) {
    %c0_i32 = arith.constant 0 : i32
    %c0_i32_0 = arith.constant 0 : i32
    %c0_i32_1 = arith.constant 0 : i32
    return %c0_i32, %arg0, %c0_i32_0 : i32, i32, i32
  }
  func.func @transform_2(%arg0: i32) -> (i32, i32) {
    %c0_i32 = arith.constant 0 : i32
    %c0_i32_0 = arith.constant 0 : i32
    return %c0_i32, %arg0 : i32, i32
  }
}

</mosaic_0001>

<bundles_post_ra>
// kernel: tpu_custom_call.1
= control target key start
LH: loop header
LB: loop body
LE: loop exit
PB: predicated region body
PF: predicated region fallthrough
CT: control target
= control target key end

     0   :  { %7 = vsyncpa [#allocation3], 0  ;;  %s3220_s0 = inlined_call_operand.hbm [shape: f32[3,1,128], index: 0, kind: input, shape index: {}]   ;;  %s3221_s1 = inlined_call_operand.hbm [shape: f32[3,1,128], index: 1, kind: input, shape index: {}]   ;;  %s3222_s2 = inlined_call_operand.hbm [shape: f32[2,128], index: 2, kind: output, shape index: {}]  }
   0x1   :  { %8 = vsyncpa [#allocation6], 0 }
   0x2   :  { %9 = vsyncpa [#allocation4], 0  ;;  %s14_s11 = sshll.u32 %s3220_s0, 4  ;;  %s2207_s12 = smov [#allocation2]   ;;  %s15_s11 = int_to_ptr.hbm [resolvable:$true] %s14_s11 }
   0x3   :  { %s16_s13 = sshll.u32 %s2207_s12, 4  ;;  %s27_s16 = sshll.u32 %s3221_s1, 4  ;;  %s17_s13 = int_to_ptr.vmem [resolvable:$true] %s16_s13  ;;  %s28_s16 = int_to_ptr.hbm [resolvable:$true] %s27_s16 }
   0x4   :  { %s2208_s17 = smov 16   ;;  %s2209_s18 = smov 1  }
   0x5   :  { %22 = dma.hbm_to_vmem [thread:$0]  %s15_s11, 48, %s17_s13, [#allocation3], %s2208_s17, %s2208_s17, %s2209_s18  }
   0x6   :  { %s2210_s19 = smov [#allocation5]  }
   0x7   :  { %s29_s20 = sshll.u32 %s2210_s19, 4  ;;  %s30_s20 = int_to_ptr.vmem [resolvable:$true] %s29_s20 }
   0x8   :  { %35 = dma.hbm_to_vmem [thread:$0]  %s28_s16, 48, %s30_s20, [#allocation6], %s2208_s17, %s2208_s17, %s2209_s18  }
   0x9   :  { %2201 = dma.done.wait [#allocation3], 48  }
   0xa   :  { %2202 = vsyncadd [#allocation3], 4294967248 }
   0xb   :  { %2203 = dma.done.wait [#allocation6], 48  }
   0xc   :  { %2204 = vsyncadd [#allocation6], 4294967248  ;;  %v2240_v0 = vld [vmem:[#allocation5] sm:$0x1]  ;;  %v2242_v1 = vld [vmem:[#allocation5 + $0x1] sm:$0x1] }
   0xd   :  { %v50_v2 = vand.u32 2139095040, %v2240_v0  ;;  %v204_v3 = vand.u32 2139095040, %v2242_v1  ;;  %v47_v7 = vand.u32 2147483647, %v2240_v0  ;;  %v2211_v16 = vmov 683565275  }
   0xe   :  { %v2212_v18 = vmov 2475754826   ;;  %v2213_v20 = vmov 2131351028   ;;  %v2214_v23 = vmov 2102212464  }
   0xf   :  { %v51_v4 = vshrl.u32 %v50_v2, 23  ;;  %v205_v5 = vshrl.u32 %v204_v3, 23  ;;  %v54_v10 = vand.u32 8388607, %v47_v7  ;;  %v2215_v25 = vmov 920167782  }
  0x10   :  { %v2216_v31 = vmov 1326507024   ;;  %v201_v52 = vand.u32 2147483647, %v2242_v1  ;;  %v2303_v53 = vld [vmem:[#allocation5 + $0x2] sm:$0x1] }
  0x11   :  { %v2068_v6 = vadd.s32 4294967169, %v51_v4  ;;  %v2071_v9 = vadd.s32 4294967169, %v205_v5  ;;  %v55_v22 = vor.u32 8388608, %v54_v10  ;;  %v358_v61 = vand.u32 2139095040, %v2303_v53  ;;  %s2218_s1 = smov [#allocation7]   ;;  %s2057_s24 = sshll.u32 %s3222_s2, 4  ;;  %s2058_s24 = int_to_ptr.hbm [resolvable:$true] %s2057_s24 }
  0x12   :  { %v208_v60 = vand.u32 8388607, %v201_v52  ;;  %s2055_s21 = sshll.u32 %s2218_s1, 4  ;;  %s2056_s21 = int_to_ptr.vmem [resolvable:$true] %s2055_s21 }
  0x13   :  { %v57_v8 = vadd.s32 1, %v2068_v6  ;;  %v211_v14 = vadd.s32 1, %v2071_v9  ;;  %v2277_v38 = vshll.u32 %v55_v22, 8 }
  0x15   :  { %vm58_vm0 = vcmp.gt.s32.totalorder %v57_v8, 0  ;;  %vm212_vm2 = vcmp.gt.s32.totalorder %v211_v14, 0  ;;  %v96_v48 = vand.u32 65535, %v2277_v38  ;;  %v97_v54 = vshrl.u32 %v2277_v38, 16 }
  0x16   :  { %v59_v11 = vsel %vm58_vm0, %v57_v8, 0  ;;  %v213_v41 = vsel %vm212_vm2, %v211_v14, 0 }
  0x17   :  { %v61_v12 = vand.u32 31, %v59_v11  ;;  %v2249_v13 = vshrl.u32 %v59_v11, 5  ;;  %v215_v49 = vand.u32 31, %v213_v41  ;;  %v2324_v9 = vshrl.u32 %v213_v41, 5 }
  0x18   :  { %v209_v41 = vor.u32 8388608, %v208_v60 }
  0x19   :  { %v2251_v15 = vsub.s32 32, %v61_v12  ;;  %v64_v17 = vshll.u32 %v2211_v16, %v61_v12  ;;  %v67_v19 = vshll.u32 %v2212_v18, %v61_v12  ;;  %v70_v21 = vshll.u32 %v2213_v20, %v61_v12 }
  0x1a   :  { %v73_v24 = vshll.u32 %v2214_v23, %v61_v12  ;;  %v76_v26 = vshll.u32 %v2215_v25, %v61_v12  ;;  %vm79_vm1 = vcmp.lt.s32.totalorder %v2249_v13, 1  ;;  %vm82_vm3 = vcmp.lt.s32.totalorder %v2249_v13, 4 }
  0x1b   :  { %v65_v27 = vshrl.u32 %v2212_v18, %v2251_v15  ;;  %v68_v28 = vshrl.u32 %v2213_v20, %v2251_v15  ;;  %v71_v29 = vshrl.u32 %v2214_v23, %v2251_v15  ;;  %v74_v30 = vshrl.u32 %v2215_v25, %v2251_v15 }
  0x1c   :  { %v77_v32 = vshrl.u32 %v2216_v31, %v2251_v15  ;;  %vm81_vm4 = vcmp.lt.s32.totalorder %v2249_v13, 3  ;;  %vm80_vm5 = vcmp.lt.s32.totalorder %v2249_v13, 2  ;;  %v2310_v59 = vsub.s32 32, %v215_v49 }
  0x1d   :  { %v2269_v33 = vor.u32 %v65_v27, %v64_v17  ;;  %v2271_v34 = vor.u32 %v68_v28, %v67_v19  ;;  %v2273_v35 = vor.u32 %v71_v29, %v70_v21  ;;  %v75_v36 = vor.u32 %v74_v30, %v73_v24 }
  0x1e   :  { %v78_v37 = vor.u32 %v77_v32, %v76_v26  ;;  %v227_v6 = vshll.u32 %v2214_v23, %v215_v49  ;;  %v228_v8 = vshrl.u32 %v2215_v25, %v2310_v59  ;;  %v218_v10 = vshll.u32 %v2211_v16, %v215_v49 }
  0x1f   :  { %v87_v39 = vsel %vm79_vm1, %v2269_v33, %v2271_v34  ;;  %v91_v40 = vsel %vm79_vm1, %v2271_v34, %v2273_v35  ;;  %v88_v42 = vsel %vm82_vm3, %v75_v36, 920167782  ;;  %v221_v11 = vshll.u32 %v2212_v18, %v215_v49 }
  0x20   :  { %v92_v43 = vsel %vm82_vm3, %v78_v37, 1326507024  ;;  %v89_v44 = vsel %vm81_vm4, %v2273_v35, %v88_v42  ;;  %v230_v12 = vshll.u32 %v2215_v25, %v215_v49  ;;  %v219_v14 = vshrl.u32 %v2212_v18, %v2310_v59 }
  0x21   :  { %v93_v45 = vsel %vm81_vm4, %v75_v36, %v92_v43  ;;  %v90_v46 = vsel %vm80_vm5, %v87_v39, %v89_v44  ;;  %v222_v17 = vshrl.u32 %v2213_v20, %v2310_v59  ;;  %v224_v19 = vshll.u32 %v2213_v20, %v215_v49 }
  0x22   :  { %v94_v47 = vsel %vm80_vm5, %v91_v40, %v93_v45  ;;  %v121_v51 = vshrl.u32 %v90_v46, 16  ;;  %v120_v56 = vand.u32 65535, %v90_v46  ;;  %v225_v21 = vshrl.u32 %v2214_v23, %v2310_v59 }
  0x23   :  { %v99_v50 = vshrl.u32 %v94_v47, 16  ;;  %v98_v55 = vand.u32 65535, %v94_v47  ;;  %v231_v26 = vshrl.u32 %v2216_v31, %v2310_v59  ;;  %v229_v29 = vor.u32 %v228_v8, %v227_v6 }
  0x24   :  { %v2308_v58 = vmul.u32 %v121_v51, %v96_v48  ;;  %v122_v63 = vmul.u32 %v120_v56, %v96_v48  ;;  %v2315_v2 = vmul.u32 %v120_v56, %v97_v54  ;;  %v125_v30 = vmul.u32 %v121_v51, %v97_v54 }
  0x25   :  { %v2306_v57 = vmul.u32 %v99_v50, %v96_v48  ;;  %v100_v62 = vmul.u32 %v98_v55, %v96_v48  ;;  %v2318_v4 = vmul.u32 %v98_v55, %v97_v54  ;;  %v232_v32 = vor.u32 %v231_v26, %v230_v12 }
  0x26   :  { %v126_v3 = vshll.u32 %v2308_v58, 16  ;;  %v128_v22 = vshll.u32 %v2315_v2, 16  ;;  %vm236_vm8 = vcmp.lt.s32.totalorder %v2324_v9, 4  ;;  %v359_v36 = vshrl.u32 %v358_v61, 23 }
  0x27   :  { %v104_v5 = vshll.u32 %v2306_v57, 16  ;;  %v106_v27 = vshll.u32 %v2318_v4, 16  ;;  %v103_v37 = vmul.u32 %v99_v50, %v97_v54  ;;  %v2217_v39 = vmov 0  }
  0x28   :  { %vm130_vm6 = vc.u32 %v122_v63, %v126_v3  ;;  %v132_v24 = vadd.s32 %v126_v3, %v122_v63  ;;  %v2342_v42 = vor.u32 %v219_v14, %v218_v10  ;;  %v2345_v44 = vor.u32 %v222_v17, %v221_v11 }
  0x29   :  { %vm108_vm7 = vc.u32 %v100_v62, %v104_v5  ;;  %v110_v28 = vadd.s32 %v104_v5, %v100_v62  ;;  %v131_v40 = vsel %vm130_vm6, 1, %v2217_v39  ;;  %v2347_v45 = vor.u32 %v225_v21, %v224_v19 }
  0x2a   :  { %v109_v43 = vsel %vm108_vm7, 1, %v2217_v39  ;;  %vm134_vm9 = vc.u32 %v132_v24, %v128_v22  ;;  %vm233_vm11 = vcmp.lt.s32.totalorder %v2324_v9, 1  ;;  %vm235_vm12 = vcmp.lt.s32.totalorder %v2324_v9, 3 }
  0x2b   :  { %vm112_vm10 = vc.u32 %v110_v28, %v106_v27  ;;  %v242_v46 = vsel %vm236_vm8, %v229_v29, 920167782  ;;  %v133_v47 = vadd.s32 %v131_v40, %v125_v30  ;;  %v246_v48 = vsel %vm236_vm8, %v232_v32, 1326507024 }
  0x2c   :  { %v2074_v49 = vadd.s32 4294967169, %v359_v36  ;;  %v111_v50 = vadd.s32 %v109_v43, %v103_v37  ;;  %v135_v51 = vsel %vm134_vm9, 1, %v2217_v39  ;;  %v113_v54 = vsel %vm112_vm10, 1, %v2217_v39 }
  0x2d   :  { %vm234_vm13 = vcmp.lt.s32.totalorder %v2324_v9, 2  ;;  %v241_v55 = vsel %vm233_vm11, %v2342_v42, %v2345_v44  ;;  %v243_v56 = vsel %vm235_vm12, %v2347_v45, %v242_v46  ;;  %v245_v60 = vsel %vm233_vm11, %v2345_v44, %v2347_v45 }
  0x2e   :  { %v247_v61 = vsel %vm235_vm12, %v229_v29, %v246_v48  ;;  %v2371_v62 = vshll.u32 %v209_v41, 8  ;;  %v127_v63 = vshrl.u32 %v2308_v58, 16  ;;  %v137_v3 = vadd.s32 %v135_v51, %v133_v47 }
  0x2f   :  { %v365_v5 = vadd.s32 1, %v2074_v49  ;;  %v105_v6 = vshrl.u32 %v2306_v57, 16  ;;  %v115_v8 = vadd.s32 %v113_v54, %v111_v50  ;;  %v244_v10 = vsel %vm234_vm13, %v241_v55, %v243_v56 }
  0x30   :  { %v248_v11 = vsel %vm234_vm13, %v245_v60, %v247_v61  ;;  %v63_v12 = vshrl.u32 %v2211_v16, %v2251_v15  ;;  %v250_v14 = vand.u32 65535, %v2371_v62  ;;  %v129_v17 = vshrl.u32 %v2315_v2, 16 }
  0x31   :  { %v138_v19 = vadd.s32 %v137_v3, %v127_v63  ;;  %v275_v58 = vshrl.u32 %v244_v10, 16  ;;  %vm366_vm14 = vcmp.gt.s32.totalorder %v365_v5, 0  ;;  %v84_v57 = vsel %vm82_vm3, %v2273_v35, 2102212464 }
  0x32   :  { %v107_v21 = vshrl.u32 %v2318_v4, 16  ;;  %v116_v26 = vadd.s32 %v115_v8, %v105_v6  ;;  %v253_v27 = vshrl.u32 %v248_v11, 16  ;;  %v83_v28 = vsel %vm79_vm1, %v63_v12, %v2269_v33 }
  0x33   :  { %v251_v15 = vshrl.u32 %v2371_v62, 16  ;;  %v367_v29 = vsel %vm366_vm14, %v365_v5, 0  ;;  %v85_v2 = vsel %vm81_vm4, %v2271_v34, %v84_v57  ;;  %v139_v30 = vadd.s32 %v138_v19, %v129_v17 }
  0x34   :  { %v274_v32 = vand.u32 65535, %v244_v10  ;;  %v2394_v36 = vmul.u32 %v275_v58, %v250_v14  ;;  %v2396_v35 = vadd.s32 %v116_v26, %v107_v21  ;;  %v2398_v4 = vadd.s32 %v132_v24, %v128_v22 }
  0x35   :  { %v252_v37 = vand.u32 65535, %v248_v11  ;;  %v2400_v40 = vmul.u32 %v253_v27, %v250_v14  ;;  %v86_v33 = vsel %vm80_vm5, %v83_v28, %v85_v2  ;;  %v143_v41 = vadd.s32 1, %v139_v30 }
  0x36   :  { %v276_v43 = vmul.u32 %v274_v32, %v250_v14  ;;  %v280_v46 = vshll.u32 %v2394_v36, 16  ;;  %v369_v47 = vand.u32 31, %v367_v29  ;;  %vm142_vm15 = vc.u32 %v2396_v35, %v2398_v4 }
  0x37   :  { %v254_v34 = vmul.u32 %v252_v37, %v250_v14  ;;  %v258_v48 = vshll.u32 %v2400_v40, 16  ;;  %v2408_v49 = vmul.u32 %v274_v32, %v251_v15  ;;  %v2410_v22 = vmul.u32 %v252_v37, %v251_v15 }
  0x38   :  { %v140_v24 = vmul.u32 %v2277_v38, %v86_v33  ;;  %v144_v50 = vsel %vm142_vm15, %v143_v41, %v139_v30  ;;  %vm284_vm0 = vc.u32 %v276_v43, %v280_v46  ;;  %v2413_v13 = vsub.s32 32, %v369_v47 }
  0x39   :  { %vm262_vm1 = vc.u32 %v254_v34, %v258_v48  ;;  %v282_v51 = vshll.u32 %v2408_v49, 16  ;;  %v2416_v54 = vadd.s32 %v280_v46, %v276_v43  ;;  %v260_v55 = vshll.u32 %v2410_v22, 16 }
  0x3a   :  { %v264_v56 = vadd.s32 %v258_v48, %v254_v34  ;;  %v279_v60 = vmul.u32 %v275_v58, %v251_v15  ;;  %v145_v61 = vadd.s32 %v144_v50, %v140_v24  ;;  %v285_v63 = vsel %vm284_vm0, 1, %v2217_v39 }
  0x3b   :  { %v355_v3 = vand.u32 2147483647, %v2303_v53  ;;  %v257_v5 = vmul.u32 %v253_v27, %v251_v15  ;;  %v263_v38 = vsel %vm262_vm1, 1, %v2217_v39  ;;  %v381_v6 = vshll.u32 %v2214_v23, %v369_v47 }
  0x3c   :  { %v382_v8 = vshrl.u32 %v2215_v25, %v2413_v13  ;;  %vm288_vm2 = vc.u32 %v2416_v54, %v282_v51  ;;  %v2428_v10 = vshrl.u32 %v367_v29, 5  ;;  %v384_v11 = vshll.u32 %v2215_v25, %v369_v47 }
  0x3d   :  { %v385_v12 = vshrl.u32 %v2216_v31, %v2413_v13  ;;  %vm266_vm3 = vc.u32 %v264_v56, %v260_v55  ;;  %v287_v14 = vadd.s32 %v285_v63, %v279_v60  ;;  %v372_v17 = vshll.u32 %v2211_v16, %v369_v47 }
  0x3e   :  { %v375_v19 = vshll.u32 %v2212_v18, %v369_v47  ;;  %v373_v58 = vshrl.u32 %v2212_v18, %v2413_v13  ;;  %v376_v57 = vshrl.u32 %v2213_v20, %v2413_v13  ;;  %v378_v21 = vshll.u32 %v2213_v20, %v369_v47 }
  0x3f   :  { %v379_v26 = vshrl.u32 %v2214_v23, %v2413_v13  ;;  %v265_v27 = vadd.s32 %v263_v38, %v257_v5  ;;  %v289_v28 = vsel %vm288_vm2, 1, %v2217_v39  ;;  %v362_v15 = vand.u32 8388607, %v355_v3 }
  0x40   :  { %v383_v29 = vor.u32 %v382_v8, %v381_v6  ;;  %v146_v2 = vadd.s32 536870912, %v145_v61  ;;  %v267_v30 = vsel %vm266_vm3, 1, %v2217_v39  ;;  %v386_v32 = vor.u32 %v385_v12, %v384_v11 }
  0x41   :  { %vm390_vm4 = vcmp.lt.s32.totalorder %v2428_v10, 4  ;;  %v259_v37 = vshrl.u32 %v2400_v40, 16  ;;  %v281_v33 = vshrl.u32 %v2394_v36, 16  ;;  %v291_v41 = vadd.s32 %v289_v28, %v287_v14 }
  0x42   :  { %v2449_v43 = vor.u32 %v373_v58, %v372_v17  ;;  %v2451_v46 = vor.u32 %v376_v57, %v375_v19  ;;  %v2453_v47 = vor.u32 %v379_v26, %v378_v21  ;;  %v269_v34 = vadd.s32 %v267_v30, %v265_v27 }
  0x43   :  { %vm387_vm5 = vcmp.lt.s32.totalorder %v2428_v10, 1  ;;  %vm389_vm6 = vcmp.lt.s32.totalorder %v2428_v10, 3  ;;  %v396_v48 = vsel %vm390_vm4, %v383_v29, 920167782  ;;  %v2459_v24 = vshrl.u32 %v146_v2, 30 }
  0x44   :  { %v363_v40 = vor.u32 8388608, %v362_v15  ;;  %v400_v36 = vsel %vm390_vm4, %v386_v32, 1326507024  ;;  %v217_v50 = vshrl.u32 %v2211_v16, %v2310_v59  ;;  %v283_v55 = vshrl.u32 %v2408_v49, 16  ;;  %v2515_v32 = vld [vmem:[#allocation2] sm:$0x1] }
  0x45   :  { %v292_v56 = vadd.s32 %v291_v41, %v281_v33  ;;  %vm388_vm7 = vcmp.lt.s32.totalorder %v2428_v10, 2  ;;  %v395_v60 = vsel %vm387_vm5, %v2449_v43, %v2451_v46  ;;  %v397_v63 = vsel %vm389_vm6, %v2453_v47, %v396_v48 }
  0x46   :  { %v261_v5 = vshrl.u32 %v2410_v22, 16  ;;  %v270_v38 = vadd.s32 %v269_v34, %v259_v37  ;;  %v399_v59 = vsel %vm387_vm5, %v2451_v46, %v2453_v47  ;;  %v401_v6 = vsel %vm389_vm6, %v383_v29, %v400_v36 }
  0x47   :  { %v148_v8 = vshll.u32 %v2459_v24, 30  ;;  %v238_v11 = vsel %vm236_vm8, %v2347_v45, 2102212464  ;;  %v2485_v12 = vshll.u32 %v363_v40, 8  ;;  %v398_v22 = vsel %vm388_vm7, %v395_v60, %v397_v63 }
  0x48   :  { %v293_v14 = vadd.s32 %v292_v56, %v283_v55  ;;  %v402_v17 = vsel %vm388_vm7, %v399_v59, %v401_v6  ;;  %v237_v19 = vsel %vm233_vm11, %v217_v50, %v2342_v42  ;;  %v239_v58 = vsel %vm235_vm12, %v2345_v44, %v238_v11 }
  0x49   :  { %v2497_v57 = vadd.s32 %v270_v38, %v261_v5  ;;  %v2502_v45 = vadd.s32 %v2416_v54, %v282_v51  ;;  %v2504_v21 = vsub.s32 %v145_v61, %v148_v8  ;;  %v404_v26 = vand.u32 65535, %v2485_v12 }
  0x4a   :  { %v429_v27 = vshrl.u32 %v398_v22, 16  ;;  %v407_v28 = vshrl.u32 %v402_v17, 16  ;;  %v240_v42 = vsel %vm234_vm13, %v237_v19, %v239_v58  ;;  %v297_v15 = vadd.s32 1, %v293_v14 }
  0x4b   :  { %vm296_vm8 = vc.u32 %v2497_v57, %v2502_v45  ;;  %v151_v44 = vsub.s32 0, %v2504_v21  ;;  %v405_v49 = vshrl.u32 %v2485_v12, 16  ;;  %v428_v29 = vand.u32 65535, %v398_v22 }
  0x4c   :  { %v431_v51 = vmul.u32 %v429_v27, %v404_v26  ;;  %vm150_vm9 = vcmp.lt.s32.totalorder %v2504_v21, 0  ;;  %v294_v54 = vmul.u32 %v2371_v62, %v240_v42  ;;  %v406_v61 = vand.u32 65535, %v402_v17 }
  0x4d   :  { %v409_v2 = vmul.u32 %v407_v28, %v404_v26  ;;  %v298_v30 = vsel %vm296_vm8, %v297_v15, %v293_v14  ;;  %v152_v9 = vsel %vm150_vm9, %v151_v44, %v2504_v21  ;;  %v430_v37 = vmul.u32 %v428_v29, %v404_v26 }
  0x4e   :  { %v432_v33 = vmul.u32 %v428_v29, %v405_v49  ;;  %v434_v41 = vshll.u32 %v431_v51, 16  ;;  %v299_v34 = vadd.s32 %v298_v30, %v294_v54  ;;  %v408_v48 = vmul.u32 %v406_v61, %v404_v26 }
  0x4f   :  { %v410_v40 = vmul.u32 %v406_v61, %v405_v49  ;;  %v412_v36 = vshll.u32 %v409_v2, 16  ;;  %v1003_v50 = vand.u32 2139095040, %v2515_v32  ;;  %v153_v55 = vclz %v152_v9 }
  0x50   :  { %v436_v56 = vshll.u32 %v432_v33, 16  ;;  %vm438_vm10 = vc.u32 %v430_v37, %v434_v41  ;;  %v440_v62 = vadd.s32 %v434_v41, %v430_v37  ;;  %v300_v63 = vadd.s32 536870912, %v299_v34 }
  0x51   :  { %v1004_v60 = vshrl.u32 %v1003_v50, 23  ;;  %v414_v5 = vshll.u32 %v410_v40, 16  ;;  %vm416_vm11 = vc.u32 %v408_v48, %v412_v36  ;;  %v418_v38 = vadd.s32 %v412_v36, %v408_v48 }
  0x52   :  { %v433_v59 = vmul.u32 %v429_v27, %v405_v49  ;;  %v411_v8 = vmul.u32 %v407_v28, %v405_v49  ;;  %v439_v11 = vsel %vm438_vm10, 1, %v2217_v39  ;;  %v417_v22 = vsel %vm416_vm11, 1, %v2217_v39 }
  0x53   :  { %v2086_v6 = vadd.s32 4294967169, %v1004_v60  ;;  %vm442_vm12 = vc.u32 %v440_v62, %v436_v56  ;;  %v2069_v17 = vadd.s32 4294967294, %v153_v55  ;;  %v2521_v19 = vshrl.u32 %v300_v63, 30 }
  0x54   :  { %vm420_vm13 = vc.u32 %v418_v38, %v414_v5  ;;  %v441_v58 = vadd.s32 %v439_v11, %v433_v59  ;;  %v419_v26 = vadd.s32 %v417_v22, %v411_v8  ;;  %v443_v42 = vsel %vm442_vm12, 1, %v2217_v39 }
  0x55   :  { %v1010_v14 = vadd.s32 1, %v2086_v6  ;;  %v421_v15 = vsel %vm420_vm13, 1, %v2217_v39  ;;  %vm2070_vm15 = vcmp.lt.s32.totalorder %v2069_v17, 0  ;;  %v302_v27 = vshll.u32 %v2521_v19, 30 }
  0x56   :  { %v435_v28 = vshrl.u32 %v431_v51, 16  ;;  %v445_v44 = vadd.s32 %v443_v42, %v441_v58  ;;  %v413_v49 = vshrl.u32 %v409_v2, 16  ;;  %v423_v29 = vadd.s32 %v421_v15, %v419_v26  ;;  %v2566_v58 = vld [vmem:[#allocation2 + $0x1] sm:$0x1] }
  0x57   :  { %vm1011_vm14 = vcmp.gt.s32.totalorder %v1010_v14, 0  ;;  %v156_v61 = vsel %vm2070_vm15, 0, %v2069_v17  ;;  %v2526_v30 = vsub.s32 %v299_v34, %v302_v27  ;;  %v371_v9 = vshrl.u32 %v2211_v16, %v2413_v13 }
  0x58   :  { %v1012_v54 = vsel %vm1011_vm14, %v1010_v14, 0  ;;  %v392_v37 = vsel %vm390_vm4, %v2453_v47, 2102212464  ;;  %v437_v41 = vshrl.u32 %v432_v33, 16  ;;  %v446_v48 = vadd.s32 %v445_v44, %v435_v28 }
  0x59   :  { %v1014_v36 = vand.u32 31, %v1012_v54  ;;  %v161_v50 = vsub.s32 4294967266, %v156_v61  ;;  %v415_v55 = vshrl.u32 %v410_v40, 16  ;;  %v424_v51 = vadd.s32 %v423_v29, %v413_v49 }
  0x5a   :  { %v141_v2 = vadd.s32 %v2398_v4, %v2396_v35  ;;  %v305_v60 = vsub.s32 0, %v2526_v30  ;;  %v391_v34 = vsel %vm387_vm5, %v371_v9, %v2449_v43  ;;  %v393_v13 = vsel %vm389_vm6, %v2451_v46, %v392_v37 }
  0x5b   :  { %v157_v47 = vsub.s32 32, %v156_v61  ;;  %vm304_vm0 = vcmp.lt.s32.totalorder %v2526_v30, 0  ;;  %v447_v33 = vadd.s32 %v446_v48, %v437_v41  ;;  %v2543_v63 = vsub.s32 32, %v1014_v36 }
  0x5c   :  { %v162_v40 = vadd.s32 127, %v161_v50  ;;  %v2545_v5 = vadd.s32 %v424_v51, %v415_v55  ;;  %v2547_v35 = vadd.s32 %v440_v62, %v436_v56  ;;  %v394_v4 = vsel %vm388_vm7, %v391_v34, %v393_v13 }
  0x5d   :  { %v1000_v43 = vand.u32 2147483647, %v2515_v32  ;;  %v158_v38 = vshll.u32 %v2504_v21, %v156_v61  ;;  %v306_v46 = vsel %vm304_vm0, %v305_v60, %v2526_v30  ;;  %v159_v59 = vshrl.u32 %v141_v2, %v157_v47 }
  0x5e   :  { %v451_v6 = vadd.s32 1, %v447_v33  ;;  %v1026_v8 = vshll.u32 %v2214_v23, %v1014_v36  ;;  %v1027_v11 = vshrl.u32 %v2215_v25, %v2543_v63  ;;  %v163_v22 = vshll.u32 %v162_v40, 23 }
  0x5f   :  { %v448_v56 = vmul.u32 %v2485_v12, %v394_v4  ;;  %vm450_vm1 = vc.u32 %v2545_v5, %v2547_v35  ;;  %v2560_v10 = vshrl.u32 %v1012_v54, 5  ;;  %v307_v62 = vclz %v306_v46 }
  0x60   :  { %v1007_v21 = vand.u32 8388607, %v1000_v43  ;;  %v1017_v14 = vshll.u32 %v2211_v16, %v1014_v36  ;;  %v1020_v17 = vshll.u32 %v2212_v18, %v1014_v36  ;;  %v1018_v26 = vshrl.u32 %v2212_v18, %v2543_v63 }
  0x61   :  { %v1021_v12 = vshrl.u32 %v2213_v20, %v2543_v63  ;;  %v1023_v42 = vshll.u32 %v2213_v20, %v1014_v36  ;;  %v1024_v15 = vshrl.u32 %v2214_v23, %v2543_v63  ;;  %v452_v27 = vsel %vm450_vm1, %v451_v6, %v447_v33 }
  0x62   :  { %v1028_v28 = vor.u32 %v1027_v11, %v1026_v8  ;;  %v1029_v44 = vshll.u32 %v2215_v25, %v1014_v36  ;;  %v1030_v49 = vshrl.u32 %v2216_v31, %v2543_v63  ;;  %v160_v29 = vor.u32 %v159_v59, %v158_v38 }
  0x63   :  { %vm1035_vm2 = vcmp.lt.s32.totalorder %v2560_v10, 4  ;;  %v164_v54 = vor.u32 4788187, %v163_v22  ;;  %v2072_v61 = vadd.s32 4294967294, %v307_v62  ;;  %v1008_v9 = vor.u32 8388608, %v1007_v21 }
  0x64   :  { %v1157_v37 = vand.u32 2139095040, %v2566_v58  ;;  %v453_v41 = vadd.s32 %v452_v27, %v448_v56  ;;  %v2580_v48 = vor.u32 %v1018_v26, %v1017_v14  ;;  %v2582_v50 = vor.u32 %v1021_v12, %v1020_v17 }
  0x65   :  { %v1025_v55 = vor.u32 %v1024_v15, %v1023_v42  ;;  %v1031_v51 = vor.u32 %v1030_v49, %v1029_v44  ;;  %vm1032_vm3 = vcmp.lt.s32.totalorder %v2560_v10, 1  ;;  %vm1034_vm4 = vcmp.lt.s32.totalorder %v2560_v10, 3 }
  0x66   :  { %v1041_v36 = vsel %vm1035_vm2, %v1028_v28, 920167782  ;;  %vm2073_vm5 = vcmp.lt.s32.totalorder %v2072_v61, 0  ;;  %v2588_v2 = vshll.u32 %v1008_v9, 8  ;;  %v1158_v60 = vshrl.u32 %v1157_v37, 23 }
  0x67   :  { %v454_v34 = vadd.s32 536870912, %v453_v41  ;;  %vm1033_vm6 = vcmp.lt.s32.totalorder %v2560_v10, 2  ;;  %v1040_v13 = vsel %vm1032_vm3, %v2580_v48, %v2582_v50  ;;  %v1042_v47 = vsel %vm1034_vm4, %v1025_v55, %v1041_v36 }
  0x68   :  { %v165_v33 = vand.u32 2147483647, %v164_v54  ;;  %v167_v40 = vcvt.s32.f32 %v160_v29  ;;  %v1045_v4 = vsel %vm1035_vm2, %v1031_v51, 1326507024  ;;  %v2599_v38 = vsel %vm2073_vm5, 0, %v2072_v61 }
  0x69   :  { %v1044_v46 = vsel %vm1032_vm3, %v2582_v50, %v1025_v55  ;;  %v1043_v59 = vsel %vm1033_vm6, %v1040_v13, %v1042_v47  ;;  %v1049_v6 = vand.u32 65535, %v2588_v2  ;;  %v1050_v8 = vshrl.u32 %v2588_v2, 16 }
  0x6a   :  { %v2089_v11 = vadd.s32 4294967169, %v1158_v60  ;;  %v295_v22 = vadd.s32 %v2502_v45, %v2497_v57  ;;  %v2610_v56 = vshrl.u32 %v454_v34, 30  ;;  %v1046_v62 = vsel %vm1034_vm4, %v1028_v28, %v1045_v4 }
  0x6b   :  { %v1073_v21 = vand.u32 65535, %v1043_v59  ;;  %v2614_v14 = vmul.f32 %v167_v40, %v165_v33  ;;  %v311_v17 = vsub.s32 32, %v2599_v38  ;;  %v1047_v26 = vsel %vm1033_vm6, %v1044_v46, %v1046_v62 }
  0x6c   :  { %v1074_v12 = vshrl.u32 %v1043_v59, 16  ;;  %v315_v42 = vsub.s32 4294967266, %v2599_v38  ;;  %v1051_v15 = vand.u32 65535, %v1047_v26  ;;  %v1052_v27 = vshrl.u32 %v1047_v26, 16 }
  0x6d   :  { %v1075_v44 = vmul.u32 %v1073_v21, %v1049_v6  ;;  %v1077_v45 = vmul.u32 %v1073_v21, %v1050_v8  ;;  %v1164_v49 = vadd.s32 1, %v2089_v11  ;;  %v456_v29 = vshll.u32 %v2610_v56, 30 }
  0x6e   :  { %v1076_v57 = vmul.u32 %v1074_v12, %v1049_v6  ;;  %v1053_v28 = vmul.u32 %v1051_v15, %v1049_v6  ;;  %v1054_v54 = vmul.u32 %v1052_v27, %v1049_v6  ;;  %v1055_v61 = vmul.u32 %v1051_v15, %v1050_v8 }
  0x6f   :  { %v169_v9 = vxor.u32 2147483648, %v2614_v14  ;;  %v312_v37 = vshll.u32 %v2526_v30, %v2599_v38  ;;  %v313_v51 = vshrl.u32 %v295_v22, %v311_v17  ;;  %vm49_vm7 = vcmp.lt.s32.totalorder %v2240_v0, 0 }
  0x70   :  { %v1079_v36 = vshll.u32 %v1076_v57, 16  ;;  %v316_v60 = vadd.s32 127, %v315_v42  ;;  %v1056_v34 = vmul.u32 %v1052_v27, %v1050_v8  ;;  %v1057_v13 = vshll.u32 %v1054_v54, 16 }
  0x71   :  { %v1059_v47 = vshll.u32 %v1055_v61, 16  ;;  %v1078_v33 = vmul.u32 %v1074_v12, %v1050_v8  ;;  %v1081_v40 = vshll.u32 %v1077_v45, 16  ;;  %vm1165_vm9 = vcmp.gt.s32.totalorder %v1164_v49, 0 }
  0x72   :  { %vm1083_vm8 = vc.u32 %v1075_v44, %v1079_v36  ;;  %v2625_v4 = vsub.s32 %v453_v41, %v456_v29  ;;  %v1016_v46 = vshrl.u32 %v2211_v16, %v2543_v63  ;;  %vm1061_vm10 = vc.u32 %v1053_v28, %v1057_v13 }
  0x73   :  { %v1063_v59 = vadd.s32 %v1057_v13, %v1053_v28  ;;  %v1037_v30 = vsel %vm1035_vm2, %v1025_v55, 2102212464  ;;  %v1062_v38 = vsel %vm1061_vm10, 1, %v2217_v39  ;;  %v1084_v6 = vsel %vm1083_vm8, 1, %v2217_v39 }
  0x74   :  { %v1085_v11 = vadd.s32 %v1079_v36, %v1075_v44  ;;  %v1058_v22 = vshrl.u32 %v1054_v54, 16  ;;  %v1064_v8 = vadd.s32 %v1062_v38, %v1056_v34  ;;  %v1166_v62 = vsel %vm1165_vm9, %v1164_v49, 0 }
  0x75   :  { %vm1065_vm11 = vc.u32 %v1063_v59, %v1059_v47  ;;  %v1080_v21 = vshrl.u32 %v1076_v57, 16  ;;  %v1086_v17 = vadd.s32 %v1084_v6, %v1078_v33  ;;  %v317_v63 = vshll.u32 %v316_v60, 23 }
  0x76   :  { %v1066_v41 = vsel %vm1065_vm11, 1, %v2217_v39  ;;  %vm1087_vm12 = vc.u32 %v1085_v11, %v1081_v40  ;;  %v1060_v26 = vshrl.u32 %v1055_v61, 16  ;;  %v1036_v55 = vsel %vm1032_vm3, %v1016_v46, %v2580_v48 }
  0x77   :  { %v1068_v12 = vadd.s32 %v1066_v41, %v1064_v8  ;;  %v1088_v42 = vsel %vm1087_vm12, 1, %v2217_v39  ;;  %v1038_v15 = vsel %vm1034_vm4, %v2582_v50, %v1037_v30  ;;  %v1082_v27 = vshrl.u32 %v1077_v45, 16 }
  0x78   :  { %v1090_v44 = vadd.s32 %v1088_v42, %v1086_v17  ;;  %v459_v49 = vsub.s32 0, %v2625_v4  ;;  %v2642_v29 = vadd.s32 %v1085_v11, %v1081_v40  ;;  %v1168_v28 = vand.u32 31, %v1166_v62 }
  0x79   :  { %v1069_v57 = vadd.s32 %v1068_v12, %v1058_v22  ;;  %vm458_vm13 = vcmp.lt.s32.totalorder %v2625_v4, 0  ;;  %v314_v61 = vor.u32 %v313_v51, %v312_v37  ;;  %v1039_v36 = vsel %vm1033_vm6, %v1036_v55, %v1038_v15 }
  0x7a   :  { %v1091_v54 = vadd.s32 %v1090_v44, %v1080_v21  ;;  %vm2651_vm14 = vcmp.le.f32.partialorder %v47_v7, 0.7853982  ;;  %v170_v45 = vsel %vm49_vm7, %v169_v9, %v2614_v14  ;;  %v318_v60 = vor.u32 4788187, %v317_v63 }
  0x7b   :  { %v2647_v48 = vadd.s32 %v1069_v57, %v1060_v26  ;;  %v460_v13 = vsel %vm458_vm13, %v459_v49, %v2625_v4  ;;  %v2661_v10 = vsub.s32 32, %v1168_v28  ;;  %v1093_v37 = vmul.u32 %v2588_v2, %v1039_v36 }
  0x7c   :  { %v1092_v34 = vadd.s32 %v1091_v54, %v1082_v27  ;;  %v2667_v7 = vsel %vm2651_vm14, %v2240_v0, %v170_v45  ;;  %v321_v47 = vcvt.s32.f32 %v314_v61  ;;  %v319_v33 = vand.u32 2147483647, %v318_v60 }
  0x7d   :  { %vm1095_vm15 = vc.u32 %v2647_v48, %v2642_v29  ;;  %v461_v14 = vclz %v460_v13  ;;  %v1154_v40 = vand.u32 2147483647, %v2566_v58  ;;  %v2670_v46 = vshrl.u32 %v1166_v62, 5 }
  0x7e   :  { %v1096_v51 = vadd.s32 1, %v1092_v34  ;;  %v1171_v59 = vshll.u32 %v2211_v16, %v1168_v28  ;;  %v1172_v30 = vshrl.u32 %v2212_v18, %v2661_v10  ;;  %v1174_v2 = vshll.u32 %v2212_v18, %v1168_v28 }
  0x7f   :  { %v1175_v6 = vshrl.u32 %v2213_v20, %v2661_v10  ;;  %v1180_v11 = vshll.u32 %v2214_v23, %v1168_v28  ;;  %v1181_v22 = vshrl.u32 %v2215_v25, %v2661_v10  ;;  %v1177_v8 = vshll.u32 %v2213_v20, %v1168_v28 }
  0x80   :  { %v1097_v9 = vsel %vm1095_vm15, %v1096_v51, %v1092_v34  ;;  %v1178_v62 = vshrl.u32 %v2214_v23, %v2661_v10  ;;  %v1183_v41 = vshll.u32 %v2215_v25, %v1168_v28  ;;  %v1184_v21 = vshrl.u32 %v2216_v31, %v2661_v10 }
  0x81   :  { %v1098_v38 = vadd.s32 %v1097_v9, %v1093_v37  ;;  %v171_v17 = vsub.s32 4, %v2459_v24  ;;  %v2690_v63 = vmul.f32 %v2667_v7, %v2667_v7  ;;  %v322_v26 = vmul.f32 %v321_v47, %v319_v33 }
  0x82   :  { %v2075_v12 = vadd.s32 4294967294, %v461_v14  ;;  %v1161_v42 = vand.u32 8388607, %v1154_v40  ;;  %v2694_v15 = vor.u32 %v1172_v30, %v1171_v59  ;;  %v2696_v27 = vor.u32 %v1175_v6, %v1174_v2 }
  0x83   :  { %v1099_v55 = vadd.s32 536870912, %v1098_v38  ;;  %v1182_v44 = vor.u32 %v1181_v22, %v1180_v11  ;;  %v2698_v49 = vor.u32 %v1178_v62, %v1177_v8  ;;  %v1185_v57 = vor.u32 %v1184_v21, %v1183_v41 }
  0x84   :  { %vm1186_vm0 = vcmp.lt.s32.totalorder %v2670_v46, 1  ;;  %vm1189_vm1 = vcmp.lt.s32.totalorder %v2670_v46, 4  ;;  %v172_v28 = vsel %vm49_vm7, %v171_v17, %v2459_v24  ;;  %vm203_vm2 = vcmp.lt.s32.totalorder %v2242_v1, 0  ;;  %v2765_v17 = vld [vmem:[#allocation2 + $0x2] sm:$0x1] }
  0x85   :  { %v325_v54 = vsub.s32 4, %v2521_v19  ;;  %vm1188_vm3 = vcmp.lt.s32.totalorder %v2670_v46, 3  ;;  %v176_v61 = vmul.f32 -0.001358992, %v2690_v63  ;;  %v183_v36 = vmul.f32 -0.00019511016, %v2690_v63 }
  0x86   :  { %v323_v45 = vxor.u32 2147483648, %v322_v26  ;;  %v1162_v60 = vor.u32 8388608, %v1161_v42  ;;  %v2710_v34 = vshrl.u32 %v1099_v55, 30  ;;  %vm1187_vm4 = vcmp.lt.s32.totalorder %v2670_v46, 2 }
  0x87   :  { %v1194_v0 = vsel %vm1186_vm0, %v2694_v15, %v2696_v27  ;;  %v1195_v24 = vsel %vm1189_vm1, %v1182_v44, 920167782  ;;  %vm2076_vm5 = vcmp.lt.s32.totalorder %v2075_v12, 0  ;;  %v1198_v37 = vsel %vm1186_vm0, %v2696_v27, %v2698_v49 }
  0x88   :  { %v1196_v13 = vsel %vm1188_vm3, %v2698_v49, %v1195_v24  ;;  %v1199_v51 = vsel %vm1189_vm1, %v1185_v57, 1326507024  ;;  %v2730_v47 = vsel %vm2651_vm14, 0, %v172_v28  ;;  %vm2734_vm6 = vcmp.le.f32.partialorder %v201_v52, 0.7853982 }
  0x89   :  { %v2741_v14 = vsel %vm203_vm2, %v325_v54, %v2521_v19  ;;  %v324_v9 = vsel %vm203_vm2, %v323_v45, %v322_v26  ;;  %v1197_v59 = vsel %vm1187_vm4, %v1194_v0, %v1196_v13  ;;  %v1200_v50 = vsel %vm1188_vm3, %v1182_v44, %v1199_v51 }
  0x8a   :  { %v2749_v30 = vshll.u32 %v1162_v60, 8  ;;  %v177_v52 = vadd.f32 0.041655596, %v176_v61  ;;  %v2751_v2 = vsel %vm2076_vm5, 0, %v2075_v12  ;;  %v1101_v6 = vshll.u32 %v2710_v34, 30 }
  0x8b   :  { %v1201_v19 = vsel %vm1187_vm4, %v1198_v37, %v1200_v50  ;;  %v184_v11 = vadd.f32 0.008332121, %v183_v36  ;;  %v2761_v41 = vsel %vm2734_vm6, %v2242_v1, %v324_v9  ;;  %v449_v21 = vadd.s32 %v2547_v35, %v2545_v5 }
  0x8c   :  { %v1203_v22 = vand.u32 65535, %v2749_v30  ;;  %v1204_v8 = vshrl.u32 %v2749_v30, 16  ;;  %v1205_v62 = vand.u32 65535, %v1201_v19  ;;  %v1206_v26 = vshrl.u32 %v1201_v19, 16 }
  0x8d   :  { %v1228_v12 = vshrl.u32 %v1197_v59, 16  ;;  %v465_v42 = vsub.s32 32, %v2751_v2  ;;  %v469_v55 = vsub.s32 4294967266, %v2751_v2  ;;  %v1227_v57 = vand.u32 65535, %v1197_v59 }
  0x8e   :  { %v1209_v44 = vmul.u32 %v1205_v62, %v1204_v8  ;;  %v2770_v28 = vmul.f32 %v177_v52, %v2690_v63  ;;  %v2772_v54 = vsub.s32 %v1098_v38, %v1101_v6  ;;  %v1207_v1 = vmul.u32 %v1205_v62, %v1203_v22 }
  0x8f   :  { %v1208_v61 = vmul.u32 %v1206_v26, %v1203_v22  ;;  %v185_v36 = vmul.f32 %v184_v11, %v2690_v63  ;;  %v2777_v5 = vmul.f32 %v2761_v41, %v2761_v41  ;;  %v466_v35 = vshll.u32 %v2625_v4, %v2751_v2 }
  0x90   :  { %v1311_v45 = vand.u32 2139095040, %v2765_v17  ;;  %v1210_v60 = vmul.u32 %v1206_v26, %v1204_v8  ;;  %v1213_v24 = vshll.u32 %v1209_v44, 16  ;;  %v1230_v13 = vmul.u32 %v1228_v12, %v1203_v22 }
  0x91   :  { %v1211_v0 = vshll.u32 %v1208_v61, 16  ;;  %v467_v37 = vshrl.u32 %v449_v21, %v465_v42  ;;  %v470_v38 = vadd.s32 127, %v469_v55  ;;  %v1170_v51 = vshrl.u32 %v2211_v16, %v2661_v10 }
  0x92   :  { %v1231_v9 = vmul.u32 %v1227_v57, %v1204_v8  ;;  %v1104_v59 = vsub.s32 0, %v2772_v54  ;;  %v1229_v52 = vmul.u32 %v1227_v57, %v1203_v22  ;;  %vm1103_vm8 = vcmp.lt.s32.totalorder %v2772_v54, 0 }
  0x93   :  { %vm1215_vm7 = vc.u32 %v1207_v1, %v1211_v0  ;;  %v1217_v50 = vadd.s32 %v1211_v0, %v1207_v1  ;;  %v1212_v4 = vshrl.u32 %v1208_v61, 16  ;;  %v1312_v6 = vshrl.u32 %v1311_v45, 23 }
  0x94   :  { %v1216_v2 = vsel %vm1215_vm7, 1, %v2217_v39  ;;  %v1232_v11 = vmul.u32 %v1228_v12, %v1204_v8  ;;  %v1233_v62 = vshll.u32 %v1230_v13, 16  ;;  %v471_v21 = vshll.u32 %v470_v38, 23 }
  0x95   :  { %v1218_v19 = vadd.s32 %v1216_v2, %v1210_v60  ;;  %vm1219_vm9 = vc.u32 %v1217_v50, %v1213_v24  ;;  %v1191_v10 = vsel %vm1189_vm1, %v2698_v49, 2102212464  ;;  %v1235_v42 = vshll.u32 %v1231_v9, 16 }
  0x96   :  { %v1220_v26 = vsel %vm1219_vm9, 1, %v2217_v39  ;;  %v1105_v22 = vsel %vm1103_vm8, %v1104_v59, %v2772_v54  ;;  %vm1237_vm10 = vc.u32 %v1229_v52, %v1233_v62  ;;  %v1239_v57 = vadd.s32 %v1233_v62, %v1229_v52 }
  0x97   :  { %v1222_v55 = vadd.s32 %v1220_v26, %v1218_v19  ;;  %v1190_v1 = vsel %vm1186_vm0, %v1170_v51, %v2694_v15  ;;  %v1214_v61 = vshrl.u32 %v1209_v44, 16  ;;  %v1238_v8 = vsel %vm1237_vm10, 1, %v2217_v39 }
  0x98   :  { %v2092_v12 = vadd.s32 4294967169, %v1312_v6  ;;  %v1234_v60 = vshrl.u32 %v1230_v13, 16  ;;  %v1240_v0 = vadd.s32 %v1238_v8, %v1232_v11  ;;  %vm1241_vm11 = vc.u32 %v1239_v57, %v1235_v42 }
  0x99   :  { %v1223_v45 = vadd.s32 %v1222_v55, %v1212_v4  ;;  %v1106_v49 = vclz %v1105_v22  ;;  %v1192_v24 = vsel %vm1188_vm3, %v2696_v27, %v1191_v10  ;;  %v1242_v38 = vsel %vm1241_vm11, 1, %v2217_v39 }
  0x9a   :  { %v1318_v59 = vadd.s32 1, %v2092_v12  ;;  %v330_v50 = vmul.f32 -0.001358992, %v2777_v5  ;;  %v468_v52 = vor.u32 %v467_v37, %v466_v35  ;;  %v1236_v15 = vshrl.u32 %v1231_v9, 16 }
  0x9b   :  { %v1244_v44 = vadd.s32 %v1242_v38, %v1240_v0  ;;  %v472_v51 = vor.u32 4788187, %v471_v21  ;;  %v2801_v2 = vadd.s32 %v1223_v45, %v1214_v61  ;;  %v2803_v4 = vadd.s32 %v1239_v57, %v1235_v42 }
  0x9c   :  { %vm1319_vm12 = vcmp.gt.s32.totalorder %v1318_v59, 0  ;;  %v1193_v13 = vsel %vm1187_vm4, %v1190_v1, %v1192_v24  ;;  %v3223_v27 = vand.u32 2147483647, %v2765_v17  ;;  %v2809_v11 = vand.u32 3, %v2730_v47  ;;  %v2825_v1 = vld [vmem:[#allocation5 + $0x2] sm:$0x1] }
  0x9d   :  { %v1245_v6 = vadd.s32 %v1244_v44, %v1234_v60  ;;  %v1320_v19 = vsel %vm1319_vm12, %v1318_v59, 0  ;;  %v2814_v35 = vsel %vm2734_vm6, 0, %v2741_v14  ;;  %v2087_v37 = vadd.s32 4294967294, %v1106_v49 }
  0x9e   :  { %v1322_v9 = vand.u32 31, %v1320_v19  ;;  %v179_v62 = vadd.f32 -0.4999988, %v2770_v28  ;;  %v186_v21 = vadd.f32 -0.16666654, %v185_v36  ;;  %v1247_v42 = vmul.u32 %v2749_v30, %v1193_v13 }
  0x9f   :  { %v337_v46 = vmul.f32 -0.00019511016, %v2777_v5  ;;  %v1246_v10 = vadd.s32 %v1245_v6, %v1236_v15  ;;  %v331_v26 = vadd.f32 0.041655596, %v330_v50  ;;  %vm1249_vm13 = vc.u32 %v2801_v2, %v2803_v4 }
  0xa0   :  { %v2821_v22 = vsub.s32 32, %v1322_v9  ;;  %v473_v55 = vand.u32 2147483647, %v472_v51  ;;  %v475_v33 = vcvt.s32.f32 %v468_v52  ;;  %v1315_v57 = vand.u32 8388607, %v3223_v27 }
  0xa1   :  { %v1250_v14 = vadd.s32 1, %v1246_v10  ;;  %vm357_vm14 = vcmp.lt.s32.totalorder %v2825_v1, 0  ;;  %vm2088_vm15 = vcmp.lt.s32.totalorder %v2087_v37, 0  ;;  %v1325_v28 = vshll.u32 %v2211_v16, %v1322_v9 }
  0xa2   :  { %v1328_v30 = vshll.u32 %v2212_v18, %v1322_v9  ;;  %v1331_v36 = vshll.u32 %v2213_v20, %v1322_v9  ;;  %v1334_v8 = vshll.u32 %v2214_v23, %v1322_v9  ;;  %v1335_v12 = vshrl.u32 %v2215_v25, %v2821_v22 }
  0xa3   :  { %v1251_v61 = vsel %vm1249_vm13, %v1250_v14, %v1246_v10  ;;  %v1337_v45 = vshll.u32 %v2215_v25, %v1322_v9  ;;  %v1326_v0 = vshrl.u32 %v2212_v18, %v2821_v22  ;;  %v1329_v49 = vshrl.u32 %v2213_v20, %v2821_v22 }
  0xa4   :  { %v1252_v60 = vadd.s32 %v1251_v61, %v1247_v42  ;;  %v1332_v24 = vshrl.u32 %v2214_v23, %v2821_v22  ;;  %v180_v38 = vmul.f32 %v179_v62, %v2690_v63  ;;  %v476_v59 = vmul.f32 %v475_v33, %v473_v55 }
  0xa5   :  { %v2842_v50 = vshrl.u32 %v1320_v19, 5  ;;  %v1338_v52 = vshrl.u32 %v2216_v31, %v2821_v22  ;;  %v187_v25 = vmul.f32 %v186_v21, %v2690_v63  ;;  %v338_v15 = vadd.f32 0.008332121, %v337_v46 }
  0xa6   :  { %vm2849_vm0 = vcmp.le.f32.partialorder %v355_v3, 0.7853982  ;;  %v1109_v20 = vsel %vm2088_vm15, 0, %v2087_v37  ;;  %v1253_v23 = vadd.s32 536870912, %v1252_v60  ;;  %v332_v44 = vmul.f32 %v331_v26, %v2777_v5 }
  0xa7   :  { %v1316_v51 = vor.u32 8388608, %v1315_v57  ;;  %v1336_v13 = vor.u32 %v1335_v12, %v1334_v8  ;;  %v1339_v6 = vor.u32 %v1338_v52, %v1337_v45  ;;  %v2857_v31 = vor.u32 %v1326_v0, %v1325_v28 }
  0xa8   :  { %v2855_v19 = vshrl.u32 %v1253_v23, 30  ;;  %v2859_v63 = vor.u32 %v1329_v49, %v1328_v30  ;;  %v2861_v9 = vor.u32 %v1332_v24, %v1331_v36  ;;  %v477_v53 = vxor.u32 2147483648, %v476_v59 }
  0xa9   :  { %v1114_v3 = vsub.s32 4294967266, %v1109_v20  ;;  %vm1340_vm1 = vcmp.lt.s32.totalorder %v2842_v50, 1  ;;  %vm1343_vm2 = vcmp.lt.s32.totalorder %v2842_v50, 4  ;;  %v339_v37 = vmul.f32 %v338_v15, %v2777_v5 }
  0xaa   :  { %v1094_v62 = vadd.s32 %v2642_v29, %v2647_v48  ;;  %v1255_v21 = vshll.u32 %v2855_v19, 30  ;;  %vm1342_vm3 = vcmp.lt.s32.totalorder %v2842_v50, 3  ;;  %v1110_v46 = vsub.s32 32, %v1109_v20 }
  0xab   :  { %v1349_v10 = vsel %vm1343_vm2, %v1336_v13, 920167782  ;;  %v1353_v26 = vsel %vm1343_vm2, %v1339_v6, 1326507024  ;;  %v2874_v42 = vshll.u32 %v1316_v51, 8  ;;  %vm1341_vm4 = vcmp.lt.s32.totalorder %v2842_v50, 2 }
  0xac   :  { %v1256_v55 = vsub.s32 %v1252_v60, %v1255_v21  ;;  %v1348_v29 = vsel %vm1340_vm1, %v2857_v31, %v2859_v63  ;;  %v1352_v48 = vsel %vm1340_vm1, %v2859_v63, %v2861_v9  ;;  %v478_v33 = vsel %vm357_vm14, %v477_v53, %v476_v59 }
  0xad   :  { %v1115_v14 = vadd.s32 127, %v1114_v3  ;;  %v1350_v57 = vsel %vm1342_vm3, %v2861_v9, %v1349_v10  ;;  %v1354_v28 = vsel %vm1342_vm3, %v1336_v13, %v1353_v26  ;;  %v1111_v30 = vshll.u32 %v2772_v54, %v1109_v20 }
  0xae   :  { %vm1257_vm5 = vcmp.lt.s32.totalorder %v1256_v55, 0  ;;  %v1258_v36 = vsub.s32 0, %v1256_v55  ;;  %v1358_v61 = vshrl.u32 %v2874_v42, 16  ;;  %v1112_v8 = vshrl.u32 %v1094_v62, %v1110_v46 }
  0xaf   :  { %v1351_v12 = vsel %vm1341_vm4, %v1348_v29, %v1350_v57  ;;  %v1355_v45 = vsel %vm1341_vm4, %v1352_v48, %v1354_v28  ;;  %v1357_v60 = vand.u32 65535, %v2874_v42  ;;  %v340_v0 = vadd.f32 -0.16666654, %v339_v37 }
  0xb0   :  { %v2900_v49 = vand.u32 3, %v2814_v35  ;;  %v1259_v24 = vsel %vm1257_vm5, %v1258_v36, %v1256_v55  ;;  %v1359_v59 = vand.u32 65535, %v1355_v45  ;;  %v2905_v54 = vsel %vm2849_vm0, %v2825_v1, %v478_v33 }
  0xb1   :  { %v1116_v52 = vshll.u32 %v1115_v14, 23  ;;  %v1260_v15 = vclz %v1259_v24  ;;  %v1360_v20 = vshrl.u32 %v1355_v45, 16  ;;  %v2907_v23 = vadd.f32 1.0, %v180_v38 }
  0xb2   :  { %v188_v51 = vadd.f32 1.0, %v187_v25  ;;  %v2909_v13 = vmul.u32 %v1359_v59, %v1358_v61  ;;  %v1382_v6 = vshrl.u32 %v1351_v12, 16  ;;  %v333_v53 = vadd.f32 -0.4999988, %v332_v44 }
  0xb3   :  { %v1113_v3 = vor.u32 %v1112_v8, %v1111_v30  ;;  %v2090_v37 = vadd.s32 4294967294, %v1260_v15  ;;  %v1362_v62 = vmul.u32 %v1360_v20, %v1357_v60  ;;  %v341_v21 = vmul.f32 %v340_v0, %v2777_v5 }
  0xb4   :  { %v2914_v46 = vmul.f32 %v2905_v54, %v2905_v54  ;;  %v1361_v10 = vmul.u32 %v1359_v59, %v1357_v60  ;;  %v1381_v26 = vand.u32 65535, %v1351_v12  ;;  %v1117_v29 = vor.u32 4788187, %v1116_v52 }
  0xb5   :  { %v1248_v38 = vadd.s32 %v2803_v4, %v2801_v2  ;;  %vm2091_vm6 = vcmp.lt.s32.totalorder %v2090_v37, 0  ;;  %v1364_v25 = vmul.u32 %v1360_v20, %v1358_v61  ;;  %v1365_v33 = vshll.u32 %v1362_v62, 16 }
  0xb6   :  { %v1263_v48 = vsel %vm2091_vm6, 0, %v2090_v37  ;;  %v1367_v44 = vshll.u32 %v2909_v13, 16  ;;  %v1384_v14 = vmul.u32 %v1382_v6, %v1357_v60  ;;  %v1120_v57 = vcvt.s32.f32 %v1113_v3 }
  0xb7   :  { %v1264_v28 = vsub.s32 32, %v1263_v48  ;;  %v1265_v30 = vshll.u32 %v1256_v55, %v1263_v48  ;;  %v1268_v36 = vsub.s32 4294967266, %v1263_v48  ;;  %v1366_v8 = vshrl.u32 %v1362_v62, 16 }
  0xb8   :  { %vm1369_vm7 = vc.u32 %v1361_v10, %v1365_v33  ;;  %v1371_v45 = vadd.s32 %v1365_v33, %v1361_v10  ;;  %v1383_v0 = vmul.u32 %v1381_v26, %v1357_v60  ;;  %v1385_v2 = vmul.u32 %v1381_v26, %v1358_v61 }
  0xb9   :  { %v1266_v12 = vshrl.u32 %v1248_v38, %v1264_v28  ;;  %v1269_v24 = vadd.s32 127, %v1268_v36  ;;  %v1370_v59 = vsel %vm1369_vm7, 1, %v2217_v39  ;;  %v1386_v52 = vmul.u32 %v1382_v6, %v1358_v61 }
  0xba   :  { %v1372_v4 = vadd.s32 %v1370_v59, %v1364_v25  ;;  %vm1373_vm8 = vc.u32 %v1371_v45, %v1367_v44  ;;  %v1387_v15 = vshll.u32 %v1384_v14, 16  ;;  %v1118_v20 = vand.u32 2147483647, %v1117_v29 }
  0xbb   :  { %v1267_v37 = vor.u32 %v1266_v12, %v1265_v30  ;;  %v1270_v27 = vshll.u32 %v1269_v24, 23  ;;  %v1374_v3 = vsel %vm1373_vm8, 1, %v2217_v39  ;;  %v1324_v55 = vshrl.u32 %v2211_v16, %v2821_v22 }
  0xbc   :  { %v1376_v62 = vadd.s32 %v1374_v3, %v1372_v4  ;;  %v1389_v10 = vshll.u32 %v1385_v2, 16  ;;  %vm1391_vm9 = vc.u32 %v1383_v0, %v1387_v15  ;;  %vm193_vm10 = vcmp.eq.s32.totalorder %v2809_v11, 0 }
  0xbd   :  { %v1271_v60 = vor.u32 4788187, %v1270_v27  ;;  %v1345_v26 = vsel %vm1343_vm2, %v2861_v9, 2102212464  ;;  %v1392_v61 = vsel %vm1391_vm9, 1, %v2217_v39  ;;  %v1393_v6 = vadd.s32 %v1387_v15, %v1383_v0 }
  0xbe   :  { %v1274_v29 = vcvt.s32.f32 %v1267_v37  ;;  %v1368_v38 = vshrl.u32 %v2909_v13, 16  ;;  %v1377_v25 = vadd.s32 %v1376_v62, %v1366_v8  ;;  %v1394_v48 = vadd.s32 %v1392_v61, %v1386_v52 }
  0xbf   :  { %v1121_v33 = vmul.f32 %v1120_v57, %v1118_v20  ;;  %v1272_v16 = vand.u32 2147483647, %v1271_v60  ;;  %v1388_v22 = vshrl.u32 %v1384_v14, 16  ;;  %vm1395_vm11 = vc.u32 %v1393_v6, %v1389_v10 }
  0xc0   :  { %v334_v44 = vmul.f32 %v333_v53, %v2777_v5  ;;  %v1344_v27 = vsel %vm1340_vm1, %v1324_v55, %v2857_v31  ;;  %v1346_v9 = vsel %vm1342_vm3, %v2859_v63, %v1345_v26  ;;  %v1396_v28 = vsel %vm1395_vm11, 1, %v2217_v39 }
  0xc1   :  { %v2938_v13 = vmul.f32 %v188_v51, %v2667_v7  ;;  %v342_v30 = vadd.f32 1.0, %v341_v21  ;;  %v1390_v57 = vshrl.u32 %v1385_v2, 16  ;;  %v1398_v36 = vadd.s32 %v1396_v28, %v1394_v48 }
  0xc2   :  { %vm192_vm12 = vcmp.lt.s32.totalorder %v2809_v11, 2  ;;  %vm196_vm13 = vcmp.eq.s32.totalorder %v2809_v11, 2  ;;  %v1275_v5 = vmul.f32 %v1274_v29, %v1272_v16  ;;  %v2942_v53 = vadd.s32 %v1377_v25, %v1368_v38 }
  0xc3   :  { %v2944_v31 = vadd.s32 %v1393_v6, %v1389_v10  ;;  %v491_v14 = vmul.f32 -0.00019511016, %v2914_v46  ;;  %v1122_v63 = vxor.u32 2147483648, %v1121_v33  ;;  %v1347_v39 = vsel %vm1341_vm4, %v1344_v27, %v1346_v9  ;;  %v2125_v27 = vld [vmem:[#allocation5] sm:$0x1] }
  0xc4   :  { %v1399_v7 = vadd.s32 %v1398_v36, %v1388_v22  ;;  %v197_v51 = vxor.u32 2147483648, %v2907_v23  ;;  %v2950_v21 = vadd.f32 1.0, %v334_v44  ;;  %vm350_vm15 = vcmp.eq.s32.totalorder %v2900_v49, 2 }
  0xc5   :  { %vm1002_vm1 = vcmp.lt.s32.totalorder %v2515_v32, 0  ;;  %v194_v8 = vxor.u32 2147483648, %v2938_v13  ;;  %v2956_v45 = vmul.f32 %v342_v30, %v2761_v41  ;;  %v484_v0 = vmul.f32 -0.001358992, %v2914_v46 }
  0xc6   :  { %v1400_v12 = vadd.s32 %v1399_v7, %v1390_v57  ;;  %vm2961_vm2 = vcmp.le.f32.partialorder %v1000_v43, 0.7853982  ;;  %v1276_v24 = vxor.u32 2147483648, %v1275_v5  ;;  %v1401_v59 = vmul.u32 %v2874_v42, %v1347_v39  ;;  %v2126_v57 = vld [vmem:[#allocation5 + $0x1] sm:$0x1] }
  0xc7   :  { %vm1403_vm3 = vc.u32 %v2942_v53, %v2944_v31  ;;  %v492_v2 = vadd.f32 0.008332121, %v491_v14  ;;  %v1123_v41 = vsel %vm1002_vm1, %v1122_v63, %v1121_v33  ;;  %vm1156_vm4 = vcmp.lt.s32.totalorder %v2566_v58, 0 }
  0xc8   :  { %v1404_v4 = vadd.s32 1, %v1400_v12  ;;  %v195_v43 = vsel %vm193_vm10, %v2907_v23, %v194_v8  ;;  %v198_v42 = vsel %vm196_vm13, %v197_v51, %v2938_v13  ;;  %v351_v52 = vxor.u32 2147483648, %v2950_v21 }
  0xc9   :  { %v479_v15 = vsub.s32 4, %v2610_v56  ;;  %v348_v20 = vxor.u32 2147483648, %v2956_v45  ;;  %v485_v37 = vadd.f32 0.041655596, %v484_v0  ;;  %v653_v3 = vadd.s32 3, %v2730_v47 }
  0xca   :  { %v1405_v55 = vsel %vm1403_vm3, %v1404_v4, %v1400_v12  ;;  %v2988_v62 = vsel %vm2961_vm2, %v2515_v32, %v1123_v41  ;;  %vm2992_vm5 = vcmp.le.f32.partialorder %v1154_v40, 0.7853982  ;;  %v1277_v60 = vsel %vm1156_vm4, %v1276_v24, %v1275_v5 }
  0xcb   :  { %v1406_v26 = vadd.s32 %v1405_v55, %v1401_v59  ;;  %vm347_vm6 = vcmp.eq.s32.totalorder %v2900_v49, 0  ;;  %v493_v47 = vmul.f32 %v492_v2, %v2914_v46  ;;  %v808_v61 = vadd.s32 3, %v2814_v35 }
  0xcc   :  { %vm346_vm7 = vcmp.lt.s32.totalorder %v2900_v49, 2  ;;  %v480_v6 = vsel %vm357_vm14, %v479_v15, %v2610_v56  ;;  %v199_v29 = vsel %vm192_vm12, %v195_v43, %v198_v42  ;;  %v352_v38 = vsel %vm350_vm15, %v351_v52, %v2956_v45 }
  0xcd   :  { %v1407_v40 = vadd.s32 536870912, %v1406_v26  ;;  %v3012_v25 = vmul.f32 %v2988_v62, %v2988_v62  ;;  %v3017_v35 = vsel %vm2992_vm5, %v2566_v58, %v1277_v60  ;;  %v349_v48 = vsel %vm347_vm6, %v2950_v21, %v348_v20 }
  0xce   :  { %v486_v56 = vmul.f32 %v485_v37, %v2914_v46  ;;  %v654_v33 = vand.u32 3, %v653_v3  ;;  %v482_v16 = vsel %vm2849_vm0, 0, %v480_v6  ;;  %v494_v22 = vadd.f32 -0.16666654, %v493_v47 }
  0xcf   :  { %v3021_v11 = vshrl.u32 %v1407_v40, 30  ;;  %v809_v44 = vand.u32 3, %v808_v61  ;;  %vm190_vm14 = vweird.f32 %v2125_v27  ;;  %v3027_v9 = vmul.f32 %v3017_v35, %v3017_v35 }
  0xd0   :  { %v3031_v30 = vsel %vm190_vm14, nan, %v199_v29  ;;  %vm344_vm8 = vweird.f32 %v2126_v57  ;;  %v353_v36 = vsel %vm346_vm7, %v349_v48, %v352_v38  ;;  %v1136_v18 = vmul.f32 -0.00019511016, %v3012_v25 }
  0xd1   :  { %v1409_v28 = vshll.u32 %v3021_v11, 30  ;;  %v487_v5 = vadd.f32 -0.4999988, %v486_v56  ;;  %vm656_vm0 = vcmp.eq.s32.totalorder %v654_v33, 0  ;;  %v963_v14 = vadd.s32 3, %v482_v16 }
  0xd2   :  { %v495_v39 = vmul.f32 %v494_v22, %v2914_v46  ;;  %vm659_vm9 = vcmp.eq.s32.totalorder %v654_v33, 2  ;;  %vm811_vm10 = vcmp.eq.s32.totalorder %v809_v44, 0  ;;  %vm814_vm11 = vcmp.eq.s32.totalorder %v809_v44, 2 }
  0xd3   :  { %v1410_v63 = vsub.s32 %v1406_v26, %v1409_v28  ;;  %v1129_v7 = vmul.f32 -0.001358992, %v3012_v25  ;;  %v1290_v0 = vmul.f32 -0.00019511016, %v3027_v9  ;;  %v3039_v24 = vand.u32 3, %v482_v16 }
  0xd4   :  { %vm655_vm13 = vcmp.lt.s32.totalorder %v654_v33, 2  ;;  %v658_v49 = vsel %vm656_vm0, %v2907_v23, %v194_v8  ;;  %v1137_v59 = vadd.f32 0.008332121, %v1136_v18  ;;  %v488_v2 = vmul.f32 %v487_v5, %v2914_v46 }
  0xd5   :  { %vm1411_vm12 = vcmp.lt.s32.totalorder %v1410_v63, 0  ;;  %v1412_v12 = vsub.s32 0, %v1410_v63  ;;  %v661_v41 = vsel %vm659_vm9, %v197_v51, %v2938_v13  ;;  %vm810_vm15 = vcmp.lt.s32.totalorder %v809_v44, 2 }
  0xd6   :  { %v496_v43 = vadd.f32 1.0, %v495_v39  ;;  %v813_v42 = vsel %vm811_vm10, %v2950_v21, %v348_v20  ;;  %v816_v15 = vsel %vm814_vm11, %v351_v52, %v2956_v45  ;;  %v1130_v3 = vadd.f32 0.041655596, %v1129_v7 }
  0xd7   :  { %v1413_v4 = vsel %vm1411_vm12, %v1412_v12, %v1410_v63  ;;  %v1283_v55 = vmul.f32 -0.001358992, %v3027_v9  ;;  %v1291_v60 = vadd.f32 0.008332121, %v1290_v0  ;;  %v3052_v8 = vsel %vm344_vm8, nan, %v353_v36 }
  0xd8   :  { %v1414_v37 = vclz %v1413_v4  ;;  %v3054_v46 = vand.u32 3, %v963_v14  ;;  %v1138_v23 = vmul.f32 %v1137_v59, %v3012_v25  ;;  %v489_v51 = vadd.f32 1.0, %v488_v2 }
  0xd9   :  { %vm501_vm3 = vcmp.eq.s32.totalorder %v3039_v24, 0  ;;  %v662_v21 = vsel %vm655_vm13, %v658_v49, %v661_v41  ;;  %v817_v45 = vsel %vm810_vm15, %v813_v42, %v816_v15  ;;  %v497_v52 = vmul.f32 %v496_v43, %v2905_v54 }
  0xda   :  { %v2093_v13 = vadd.s32 4294967294, %v1414_v37  ;;  %v1124_v20 = vsub.s32 4, %v2710_v34  ;;  %v1402_v26 = vadd.s32 %v2944_v31, %v2942_v53  ;;  %vm500_vm7 = vcmp.lt.s32.totalorder %v3039_v24, 2 }
  0xdb   :  { %v1131_v47 = vmul.f32 %v1130_v3, %v3012_v25  ;;  %v1284_v61 = vadd.f32 0.041655596, %v1283_v55  ;;  %v1292_v6 = vmul.f32 %v1291_v60, %v3027_v9  ;;  %v1139_v29 = vadd.f32 -0.16666654, %v1138_v23 }
  0xdc   :  { %vm2094_vm6 = vcmp.lt.s32.totalorder %v2093_v13, 0  ;;  %vm504_vm0 = vcmp.eq.s32.totalorder %v3039_v24, 2  ;;  %v3069_v54 = vsel %vm190_vm14, nan, %v662_v21  ;;  %v3072_v53 = vsel %vm344_vm8, nan, %v817_v45 }
  0xdd   :  { %v1417_v40 = vsel %vm2094_vm6, 0, %v2093_v13  ;;  %vm966_vm9 = vcmp.eq.s32.totalorder %v3054_v46, 0  ;;  %v502_v31 = vxor.u32 2147483648, %v497_v52  ;;  %v505_v33 = vxor.u32 2147483648, %v489_v51 }
  0xde   :  { %v1418_v38 = vsub.s32 32, %v1417_v40  ;;  %v1419_v48 = vshll.u32 %v1410_v63, %v1417_v40  ;;  %v1422_v56 = vsub.s32 4294967266, %v1417_v40  ;;  %vm965_vm10 = vcmp.lt.s32.totalorder %v3054_v46, 2 }
  0xdf   :  { %vm498_vm11 = vweird.f32 %v2825_v1  ;;  %v1125_v44 = vsel %vm1002_vm1, %v1124_v20, %v2710_v34  ;;  %v1278_v27 = vsub.s32 4, %v2855_v19  ;;  %v1285_v28 = vmul.f32 %v1284_v61, %v3027_v9 }
  0xe0   :  { %v1420_v16 = vshrl.u32 %v1402_v26, %v1418_v38  ;;  %v1423_v22 = vadd.s32 127, %v1422_v56  ;;  %v1293_v57 = vadd.f32 -0.16666654, %v1292_v6  ;;  %v1132_v36 = vadd.f32 -0.4999988, %v1131_v47 }
  0xe1   :  { %v1140_v18 = vmul.f32 %v1139_v29, %v3012_v25  ;;  %vm969_vm14 = vcmp.eq.s32.totalorder %v3054_v46, 2  ;;  %v975_v63 = vsub.f32 0.0, %v3052_v8  ;;  %v3087_v39 = vmul.f32 %v3072_v53, %v3069_v54 }
  0xe2   :  { %v1421_v5 = vor.u32 %v1420_v16, %v1419_v48  ;;  %v1424_v14 = vshll.u32 %v1423_v22, 23  ;;  %v981_v32 = vsub.f32 0.0, %v3069_v54  ;;  %v506_v34 = vsel %vm504_vm0, %v505_v33, %v497_v52  ;;  %v2127_v48 = vld [vmem:[#allocation2] sm:$0x1] }
  0xe3   :  { %v1127_v7 = vsel %vm2961_vm2, 0, %v1125_v44  ;;  %v503_v49 = vsel %vm501_vm3, %v489_v51, %v502_v31  ;;  %v1279_v59 = vsel %vm1156_vm4, %v1278_v27, %v2855_v19  ;;  %v1286_v2 = vadd.f32 -0.4999988, %v1285_v28 }
  0xe4   :  { %v1425_v0 = vor.u32 4788187, %v1424_v14  ;;  %v1428_v12 = vcvt.s32.f32 %v1421_v5  ;;  %v1294_v41 = vmul.f32 %v1293_v57, %v3027_v9  ;;  %v987_v4 = vsub.f32 0.0, %v3031_v30 }
  0xe5   :  { %v1133_v43 = vmul.f32 %v1132_v36, %v3012_v25  ;;  %v1141_v42 = vadd.f32 1.0, %v1140_v18  ;;  %v968_v50 = vsel %vm966_vm9, %v489_v51, %v502_v31  ;;  %v971_v37 = vsel %vm969_vm14, %v505_v33, %v497_v52 }
  0xe6   :  { %v1426_v15 = vand.u32 2147483647, %v1425_v0  ;;  %v3108_v3 = vmul.f32 %v3072_v53, %v3031_v30  ;;  %v1606_v58 = vadd.s32 3, %v1127_v7  ;;  %v507_v19 = vsel %vm500_vm7, %v503_v49, %v506_v34 }
  0xe7   :  { %v3112_v55 = vand.u32 3, %v1127_v7  ;;  %v1281_v25 = vsel %vm2992_vm5, 0, %v1279_v59  ;;  %v1287_v23 = vmul.f32 %v1286_v2, %v3027_v9  ;;  %v1295_v13 = vadd.f32 1.0, %v1294_v41 }
  0xe8   :  { %v1429_v60 = vmul.f32 %v1428_v12, %v1426_v15  ;;  %vm1310_vm1 = vcmp.lt.s32.totalorder %v2765_v17, 0  ;;  %v1432_v51 = vsub.s32 4, %v3021_v11  ;;  %v1134_v21 = vadd.f32 1.0, %v1133_v43 }
  0xe9   :  { %v1142_v45 = vmul.f32 %v1141_v42, %v2988_v62  ;;  %v3234_v52 = vand.u32 2147483647, %v2765_v17  ;;  %v972_v10 = vsel %vm965_vm10, %v968_v50, %v971_v37  ;;  %v3131_v9 = vmul.f32 %v981_v32, %v3072_v53 }
  0xea   :  { %v1430_v20 = vxor.u32 2147483648, %v1429_v60  ;;  %v1607_v26 = vand.u32 3, %v1606_v58  ;;  %v1761_v47 = vadd.s32 3, %v1281_v25  ;;  %v3135_v62 = vsel %vm498_vm11, nan, %v507_v19  ;;  %v2128_v19 = vld [vmem:[#allocation2 + $0x1] sm:$0x1] }
  0xeb   :  { %vm3122_vm2 = vcmp.le.f32.partialorder %v3234_v52, 0.7853982  ;;  %vm1145_vm4 = vcmp.lt.s32.totalorder %v3112_v55, 2  ;;  %v1298_v61 = vand.u32 3, %v1281_v25  ;;  %v1288_v40 = vadd.f32 1.0, %v1287_v23 }
  0xec   :  { %v1431_v6 = vsel %vm1310_vm1, %v1430_v20, %v1429_v60  ;;  %v1296_v46 = vmul.f32 %v1295_v13, %v3017_v35  ;;  %v1433_v29 = vsel %vm1310_vm1, %v1432_v51, %v3021_v11  ;;  %vm1143_vm5 = vweird.f32 %v2127_v48 }
  0xed   :  { %v1434_v38 = vsel %vm3122_vm2, %v2765_v17, %v1431_v6  ;;  %vm1146_vm8 = vcmp.eq.s32.totalorder %v3112_v55, 0  ;;  %v1147_v56 = vxor.u32 2147483648, %v1142_v45  ;;  %v1150_v31 = vxor.u32 2147483648, %v1134_v21 }
  0xee   :  { %v1436_v33 = vmul.f32 %v1434_v38, %v1434_v38  ;;  %vm1149_vm12 = vcmp.eq.s32.totalorder %v3112_v55, 2  ;;  %vm1609_vm13 = vcmp.eq.s32.totalorder %v1607_v26, 0  ;;  %vm1612_vm15 = vcmp.eq.s32.totalorder %v1607_v26, 2 }
  0xef   :  { %v1762_v35 = vand.u32 3, %v1761_v47  ;;  %vm1300_vm3 = vcmp.eq.s32.totalorder %v1298_v61, 0  ;;  %v1435_v11 = vsel %vm3122_vm2, 0, %v1433_v29  ;;  %v1301_v44 = vxor.u32 2147483648, %v1296_v46 }
  0xf0   :  { %v1437_v16 = vmul.f32 -0.001358992, %v1436_v33  ;;  %v1444_v22 = vmul.f32 -0.00019511016, %v1436_v33  ;;  %vm1303_vm6 = vcmp.eq.s32.totalorder %v1298_v61, 2  ;;  %v1304_v27 = vxor.u32 2147483648, %v1288_v40 }
  0xf1   :  { %vm1608_vm7 = vcmp.lt.s32.totalorder %v1607_v26, 2  ;;  %v1611_v36 = vsel %vm1609_vm13, %v1134_v21, %v1147_v56  ;;  %v1614_v18 = vsel %vm1612_vm15, %v1150_v31, %v1142_v45  ;;  %v1151_v5 = vsel %vm1149_vm12, %v1150_v31, %v1142_v45 }
  0xf2   :  { %v1438_v28 = vadd.f32 0.041655596, %v1437_v16  ;;  %v1445_v57 = vadd.f32 0.008332121, %v1444_v22  ;;  %vm1764_vm0 = vcmp.eq.s32.totalorder %v1762_v35, 0  ;;  %vm1767_vm9 = vcmp.eq.s32.totalorder %v1762_v35, 2 }
  0xf3   :  { %v1916_v14 = vadd.s32 3, %v1435_v11  ;;  %v1148_v34 = vsel %vm1146_vm8, %v1134_v21, %v1147_v56  ;;  %vm1299_vm10 = vcmp.lt.s32.totalorder %v1298_v61, 2  ;;  %v1302_v12 = vsel %vm1300_vm3, %v1288_v40, %v1301_v44 }
  0xf4   :  { %v1439_v7 = vmul.f32 %v1438_v28, %v1436_v33  ;;  %v1446_v0 = vmul.f32 %v1445_v57, %v1436_v33  ;;  %v1305_v49 = vsel %vm1303_vm6, %v1304_v27, %v1296_v46  ;;  %v1615_v59 = vsel %vm1608_vm7, %v1611_v36, %v1614_v18 }
  0xf5   :  { %vm1763_vm14 = vcmp.lt.s32.totalorder %v1762_v35, 2  ;;  %v1766_v43 = vsel %vm1764_vm0, %v1288_v40, %v1301_v44  ;;  %v1769_v42 = vsel %vm1767_vm9, %v1304_v27, %v1296_v46  ;;  %v3159_v15 = vsel %vm498_vm11, nan, %v972_v10 }
  0xf6   :  { %v1440_v2 = vadd.f32 -0.4999988, %v1439_v7  ;;  %v1447_v41 = vadd.f32 -0.16666654, %v1446_v0  ;;  %v1152_v50 = vsel %vm1145_vm4, %v1148_v34, %v1151_v5  ;;  %v1452_v37 = vand.u32 3, %v1435_v11 }
  0xf7   :  { %v1917_v58 = vand.u32 3, %v1916_v14  ;;  %vm1297_vm1 = vweird.f32 %v2128_v19  ;;  %v1306_v25 = vsel %vm1299_vm10, %v1302_v12, %v1305_v49  ;;  %v974_v13 = vmul.f32 %v3135_v62, %v3052_v8 }
  0xf8   :  { %v1441_v60 = vmul.f32 %v1440_v2, %v1436_v33  ;;  %v1448_v23 = vmul.f32 %v1447_v41, %v1436_v33  ;;  %v988_v1 = vmul.f32 %v987_v4, %v3072_v53  ;;  %v1616_v51 = vsel %vm1143_vm5, nan, %v1615_v59 }
  0xf9   :  { %v1770_v55 = vsel %vm1763_vm14, %v1766_v43, %v1769_v42  ;;  %v976_v21 = vmul.f32 %v975_v63, %v3159_v15  ;;  %v978_v45 = vmul.f32 %v3087_v39, %v3135_v62  ;;  %v3177_v20 = vsel %vm1143_vm5, nan, %v1152_v50 }
  0xfa   :  { %v1442_v52 = vadd.f32 1.0, %v1441_v60  ;;  %v1449_v24 = vadd.f32 1.0, %v1448_v23  ;;  %v3180_v10 = vsel %vm1297_vm1, nan, %v1306_v25  ;;  %vm1457_vm11 = vcmp.eq.s32.totalorder %v1452_v37, 2 }
  0xfb   :  { %vm1922_vm2 = vcmp.eq.s32.totalorder %v1917_v58, 2  ;;  %v1771_v47 = vsel %vm1297_vm1, nan, %v1770_v55  ;;  %v1934_v61 = vsub.f32 0.0, %v1616_v51  ;;  %vm1453_vm4 = vcmp.lt.s32.totalorder %v1452_v37, 2 }
  0xfc   :  { %v1450_v4 = vmul.f32 %v1449_v24, %v1434_v38  ;;  %v1458_v26 = vxor.u32 2147483648, %v1442_v52  ;;  %vm1454_vm8 = vcmp.eq.s32.totalorder %v1452_v37, 0  ;;  %vm1918_vm12 = vcmp.lt.s32.totalorder %v1917_v58, 2 }
  0xfd   :  { %vm1919_vm13 = vcmp.eq.s32.totalorder %v1917_v58, 0  ;;  %v1940_v40 = vsub.f32 0.0, %v3177_v20  ;;  %v979_v46 = vmul.f32 %v3159_v15, %v3031_v30  ;;  %vm1451_vm5 = vweird.f32 %v2765_v17 }
  0xfe   :  { %v1455_v63 = vxor.u32 2147483648, %v1450_v4  ;;  %v1459_v39 = vsel %vm1457_vm11, %v1458_v26, %v1450_v4  ;;  %v1924_v6 = vsel %vm1922_vm2, %v1458_v26, %v1450_v4  ;;  %v1928_v29 = vsub.f32 0.0, %v3180_v10 }
  0xff   :  { %v1930_v38 = vmul.f32 %v1771_v47, %v1616_v51  ;;  %v983_v48 = vmul.f32 %v3131_v9, %v3159_v15  ;;  %v1935_v33 = vmul.f32 %v1934_v61, %v1771_v47  ;;  %v984_v35 = vmul.f32 %v3135_v62, %v3031_v30 }
 0x100   :  { %v1456_v56 = vsel %vm1454_vm8, %v1442_v52, %v1455_v63  ;;  %v1921_v31 = vsel %vm1919_vm13, %v1442_v52, %v1455_v63  ;;  %v989_v11 = vmul.f32 %v988_v1, %v3135_v62  ;;  %v990_v17 = vmul.f32 %v3159_v15, %v3069_v54 }
 0x101   :  { %v1460_v16 = vsel %vm1453_vm4, %v1456_v56, %v1459_v39  ;;  %v1925_v22 = vsel %vm1918_vm12, %v1921_v31, %v1924_v6  ;;  %v1941_v28 = vmul.f32 %v1940_v40, %v1771_v47  ;;  %v980_v5 = vadd.f32 %v979_v46, %v978_v45 }
 0x102   :  { %v1461_v44 = vsel %vm1451_vm5, nan, %v1460_v16  ;;  %v1926_v27 = vsel %vm1451_vm5, nan, %v1925_v22  ;;  %v1945_v7 = vmul.f32 %v1771_v47, %v3177_v20  ;;  %v985_v0 = vadd.f32 %v984_v35, %v983_v48 }
 0x103   :  { %v1927_v9 = vmul.f32 %v1461_v44, %v3180_v10  ;;  %v1929_v57 = vmul.f32 %v1928_v29, %v1926_v27  ;;  %v1931_v36 = vmul.f32 %v1930_v38, %v1461_v44  ;;  %v1932_v18 = vmul.f32 %v1926_v27, %v3177_v20 }
 0x104   :  { %v1936_v14 = vmul.f32 %v1935_v33, %v1926_v27  ;;  %v1937_v34 = vmul.f32 %v1461_v44, %v3177_v20  ;;  %v1953_v59 = vmul.f32 %v1771_v47, %v3072_v53  ;;  %v1942_v41 = vmul.f32 %v1941_v28, %v1461_v44 }
 0x105   :  { %v1933_v12 = vadd.f32 %v1932_v18, %v1931_v36  ;;  %v1950_v49 = vmul.f32 %v1927_v9, %v974_v13  ;;  %v1943_v43 = vmul.f32 %v1926_v27, %v1616_v51  ;;  %v1951_v42 = vmul.f32 %v1929_v57, %v976_v21 }
 0x106   :  { %v1938_v2 = vadd.f32 %v1937_v34, %v1936_v14  ;;  %v986_v50 = vmul.f32 %v981_v32, %v3052_v8  ;;  %v993_v37 = vmul.f32 %v3108_v3, %v3159_v15  ;;  %v994_v58 = vmul.f32 %v3069_v54, %v3135_v62 }
 0x107   :  { %v1939_v19 = vmul.f32 %v1934_v61, %v3180_v10  ;;  %v1946_v25 = vmul.f32 %v1945_v7, %v1926_v27  ;;  %v1947_v60 = vmul.f32 %v1616_v51, %v1461_v44  ;;  %v1952_v23 = vadd.f32 %v1951_v42, %v1950_v49 }
 0x108   :  { %v1955_v53 = vmul.f32 %v1933_v12, %v980_v5  ;;  %v991_v13 = vadd.f32 %v990_v17, %v989_v11  ;;  %v1944_v1 = vadd.f32 %v1943_v43, %v1942_v41  ;;  %v1957_v21 = vmul.f32 %v1938_v2, %v985_v0 }
 0x109   :  { %v1954_v55 = vadd.f32 %v1953_v59, %v1952_v23  ;;  %v995_v45 = vadd.f32 %v994_v58, %v993_v37  ;;  %v1948_v52 = vadd.f32 %v1947_v60, %v1946_v25  ;;  %v1959_v32 = vmul.f32 %v1939_v19, %v986_v50 }
 0x10a   :  { %v996_v3 = vmul.f32 %v3052_v8, %v3031_v30  ;;  %v1949_v54 = vmul.f32 %v3180_v10, %v3177_v20  ;;  %v1961_v15 = vmul.f32 %v1944_v1, %v991_v13  ;;  %v2011_v36 = vlaneseq }
 0x10b   :  { %v1956_v24 = vadd.f32 %v1955_v53, %v1954_v55  ;;  %v1963_v51 = vmul.f32 %v1948_v52, %v995_v45  ;;  %vm2021_vm9 = vcmask 1040384  }
 0x10c   :  { %v1965_v47 = vmul.f32 %v1949_v54, %v996_v3  ;;  %v2012_v7 = vshrl.u32 %v2011_v36, 7  ;;  %v2014_v49 = vand.u32 127, %v2011_v36 }
 0x10d   :  { %v1958_v62 = vadd.f32 %v1957_v21, %v1956_v24 }
 0x10e   :  { %v2017_v59 = vmul.u32 128, %v2012_v7  ;;  %vm2043_vm10 = vcmp.eq.s32.totalorder %v2012_v7, 0  ;;  %vm2047_vm14 = vcmp.eq.s32.totalorder %v2014_v49, 0 }
 0x10f   :  { %v1960_v4 = vadd.f32 %v1959_v32, %v1958_v62 }
 0x110   :  { %v2018_v37 = vadd.s32 %v2017_v59, %v2014_v49 }
 0x111   :  { %v1962_v26 = vadd.f32 %v1961_v15, %v1960_v4 }
 0x112   :  { %vm2019_vm0 = vcmp.lt.s32.totalorder %v2018_v37, 8 }
 0x113   :  { %v1964_v61 = vadd.f32 %v1963_v51, %v1962_v26 }
 0x115   :  { %v1966_v63 = vadd.f32 %v1965_v47, %v1964_v61 }
 0x117   :  { %v2104_v39 = vadd.f32 -1.0, %v1966_v63 }
 0x119   :  { %v1968_v6 = vmul.f32 0.5, %v2104_v39 }
 0x11b   :  { %v2105_v40 = vclamps-f32 %v1968_v6, 1.0 }
 0x11d   :  { %v1971_v46 = vand.u32 2147483647, %v2105_v40  ;;  %vm2001_vm7 = vcmp.lt.f32.partialorder %v2105_v40, 0.0 }
 0x11f   :  { %v1973_v29 = vmul.f32 %v1971_v46, %v1971_v46  ;;  %v1974_v38 = vsub.f32 1.0, %v1971_v46  ;;  %vm1972_vm15 = vcmp.le.f32.partialorder %v1971_v46, 0.5 }
 0x121   :  { %v1975_v48 = vmul.f32 0.5, %v1974_v38 }
 0x123   :  { %v1976_v30 = vsel %vm1972_vm15, %v1973_v29, %v1975_v48 }
 0x124   :  { %2122 = vrsqrt.f32 %v1976_v30  ;;  %v1990_v8 = vmul.f32 0.0421632, %v1976_v30  ;;  %vm1984_vm3 = vcmp.eq.f32.partialorder %v1976_v30, inf  ;;  %v1987_v27 = vand.u32 2147483648, %v1976_v30 }
 0x125   :  { %vm1986_vm6 = vcmp.eq.f32.partialorder %v1976_v30, 0.0 }
 0x126   :  { %v1991_v20 = vadd.f32 0.024181312, %v1990_v8 }
 0x128   :  { %v1992_v10 = vmul.f32 %v1991_v20, %v1976_v30 }
 0x12a   :  { %v2123_v56 = vpop.eup %2122  ;;  %v1993_v33 = vadd.f32 0.045470025, %v1992_v10 }
 0x12b   :  { %v1978_v31 = vmul.f32 %v2123_v56, %v1976_v30 }
 0x12c   :  { %v1994_v11 = vmul.f32 %v1993_v33, %v1976_v30 }
 0x12d   :  { %v1979_v35 = vmul.f32 %v2123_v56, %v1978_v31 }
 0x12e   :  { %v1995_v22 = vadd.f32 0.074953005, %v1994_v11 }
 0x12f   :  { %v1980_v16 = vmul.f32 0.5, %v1979_v35 }
 0x130   :  { %v1996_v28 = vmul.f32 %v1995_v22, %v1976_v30 }
 0x131   :  { %v1981_v17 = vsub.f32 1.5, %v1980_v16 }
 0x132   :  { %v1997_v5 = vadd.f32 0.16666752, %v1996_v28 }
 0x133   :  { %v1982_v44 = vmul.f32 %v2123_v56, %v1981_v17 }
 0x135   :  { %v1983_v9 = vmul.f32 %v1982_v44, %v1976_v30 }
 0x137   :  { %v1985_v57 = vsel %vm1984_vm3, %v1976_v30, %v1983_v9 }
 0x138   :  { %v1988_v18 = vsel %vm1986_vm6, %v1987_v27, %v1985_v57 }
 0x139   :  { %v1989_v14 = vsel %vm1972_vm15, %v1971_v46, %v1988_v18 }
 0x13a   :  { %v1998_v34 = vmul.f32 %v1989_v14, %v1976_v30 }
 0x13c   :  { %v1999_v0 = vmul.f32 %v1998_v34, %v1997_v5 }
 0x13e   :  { %v2000_v12 = vadd.f32 %v1999_v0, %v1989_v14 }
 0x140   :  { %v2002_v2 = vadd.f32 1.5707964, %v2000_v12  ;;  %v2003_v41 = vsub.f32 1.5707964, %v2000_v12  ;;  %v2005_v43 = vmul.f32 2.0, %v2000_v12 }
 0x142   :  { %v2004_v42 = vsel %vm2001_vm7, %v2002_v2, %v2003_v41  ;;  %v2006_v50 = vsub.f32 3.1415927, %v2005_v43 }
 0x144   :  { %v2007_v58 = vsel %vm2001_vm7, %v2006_v50, %v2005_v43 }
 0x145   :  { %v2008_v19 = vsel %vm1972_vm15, %v2004_v42, %v2007_v58 }
 0x146   :  { %v2009_v25 = vmax.f32 %v2008_v19, 0.0004472136  ;;  %v2032_v13 = vsel %vm2019_vm0, %v2008_v19, 0.0 }
 0x147   :  { %v2033_v1 = vsel %vm2021_vm9, %v2032_v13, 0.0 }
 0x148   :  { %v2010_v60 = vmin.f32 %v2009_v25, 3.1411455 }
 0x14a   :  { %v2020_v23 = vsel %vm2019_vm0, %v2010_v60, 0.0 }
 0x14b   :  { %v2022_v53 = vsel %vm2021_vm9, %v2020_v23, 0.0 }
 0x14c   :  { %2023 = vadd.xlane.f32.xlu0 %v2022_v53 }
 0x154   :  { %2034 = vadd.xlane.f32.xlu0 %v2033_v1 }
 0x1bf   :  { %v2024_v55 = vpop.xlane.xlu0 %2023 }
 0x1c0   :  { %v2025_v21 = vrot.slane %v2024_v55, 4 }
 0x1c2   :  { %v2026_v45 = vadd.f32 %v2025_v21, %v2024_v55 }
 0x1c4   :  { %v2027_v52 = vrot.slane %v2026_v45, 2 }
 0x1c6   :  { %v2028_v24 = vadd.f32 %v2027_v52, %v2026_v45 }
 0x1c7   :  { %v2035_v32 = vpop.xlane.xlu0 %2034 }
 0x1c8   :  { %v2029_v3 = vrot.slane %v2028_v24, 1  ;;  %v2036_v54 = vrot.slane %v2035_v32, 4 }
 0x1ca   :  { %v2030_v62 = vadd.f32 %v2029_v3, %v2028_v24  ;;  %v2037_v15 = vadd.f32 %v2036_v54, %v2035_v32 }
 0x1cc   :  { %2106 = vpush %v2030_v62  ;;  %v2038_v4 = vrot.slane %v2037_v15, 2 }
 0x1ce   :  { %v2039_v51 = vadd.f32 %v2038_v4, %v2037_v15 }
 0x1d0   :  { %v2040_v26 = vrot.slane %v2039_v51, 1 }
 0x1d2   :  { %v2041_v47 = vadd.f32 %v2040_v26, %v2039_v51 }
 0x1d4   :  { %2108 = vpush %v2041_v47 }
 0x1fd   :  { %s2107_s0 = spop %2106 }
 0x1fe   :  { %v2044_v61 = vstv %s2107_s0 }
 0x205   :  { %s2109_s25 = spop %2108 }
 0x206   :  { %v2045_v63 = vstv %s2109_s25 }
 0x207   :  { %v2046_v39 = vsel %vm2043_vm10, %v2044_v61, %v2045_v63 }
 0x208   :  { %v2048_v6 = vsel %vm2047_vm14, %v2046_v39, 0.0 }
 0x209   :  { %2049 = vst [vmem:[#allocation7] sm:$0x3] %v2048_v6 }
 0x20a   :  { %2060 = dma.vmem_to_hbm [thread:$0]  %s2056_s21, 32, %s2058_s24, [#allocation4]  }
 0x20b   :  { %2205 = dma.done.wait [#allocation4], 32  }
 0x20c   :  { %2206 = vsyncadd [#allocation4], 4294967264 }
 0x20d   :  { %2065 = vsyncpa [#allocation3], 1 }
 0x20e   :  { %2066 = vsyncpa [#allocation6], 1 }
 0x20f   :  { %2067 = vsyncpa [#allocation4], 1 }

</bundles_post_ra>
